<compile_context>
chip_gen: v7x
topology: tpu7x:2x2x1
jax: 0.10.0
libtpu: 0.0.40
codegen_flags: <defaults>
</compile_context>

<pallas_src>
import math

import jax
import jax.numpy as jnp
from jax import lax
from jax.experimental import pallas as pl
from jax.experimental.pallas import tpu as pltpu


def _make_kernel(C, C8p, N, TN, T, exp_dtype, unroll):
    """Kernel closure over static shape / dtype parameters."""

    def kernel(x_ref, wfg_ref, bfg_ref, wvhT_ref, bvh_ref, bv_ref, gamma_ref,
               out_ref, fg_s, hh_s, sa_acc):
        # ---- once per batch element: fused projections -------------------
        x_bf = x_ref[...]                                    # (C, N) bf16

        # f and g in one MXU pass: (2*C8p, C) @ (C, N) -> (2*C8p, N)
        fg = jnp.dot(wfg_ref[...], x_bf,
                     preferred_element_type=jnp.float32) + bfg_ref[...]
        fg_s[...] = fg.astype(jnp.bfloat16)

        # Combined (Wv Wh) projection, stored transposed (N, C) so the
        # per-query 1/l column broadcasts onto it without a lane transpose:
        #   hh_T[n, c] = sum_k x[k, n] * w_vhT[k, c]  ( = (Wv Wh x + Wv bh)[c, n] )
        hh_T = lax.dot_general(
            x_bf, wvhT_ref[...],
            dimension_numbers=(((0,), (0,)), ((), ())),
            preferred_element_type=jnp.float32) + bvh_ref[...]
        hh_s[...] = hh_T.astype(jnp.bfloat16)

        sa_acc[...] = jnp.zeros_like(sa_acc)

        # ---- loop over query-row tiles ------------------------------------
        def tile_body(t, carry):
            q0 = pl.multiple_of(t * TN, TN)

            # scores[n, m] = sum_c f[c, n] * g[c, m]   (axis-0 contraction)
            f_t = fg_s[0:C8p, pl.ds(q0, TN)]                 # (C8p, TN) bf16
            g_all = fg_s[C8p:2 * C8p, :]                     # (C8p, N)  bf16
            scores = lax.dot_general(
                f_t, g_all,
                dimension_numbers=(((0,), (0,)), ((), ())),
                preferred_element_type=jnp.float32)          # (TN, N) fp32

            # Exact softmax over the full row; fp32 statistics, exp in
            # exp_dtype (bf16 on v6e/v7x -> 2x EUP throughput).
            m = jnp.max(scores, axis=-1, keepdims=True)      # (TN, 1) fp32
            e = jnp.exp((scores - m).astype(exp_dtype))      # (TN, N)
            l = jnp.sum(e.astype(jnp.float32), axis=-1, keepdims=True)
            inv_l = pl.reciprocal(l, approx=True)            # (TN, 1) fp32

            # Fold 1/l into the small (TN, C) h tile, not the (TN, N) slab.
            hh_t = hh_s[pl.ds(q0, TN), :]                    # (TN, C) bf16
            hh_scaled = (hh_t * inv_l).astype(jnp.bfloat16)  # (TN, C)

            # sa_acc[c, m] += sum_n hh_scaled[n, c] * e[n, m]
            sa_acc[...] += lax.dot_general(
                hh_scaled, e.astype(jnp.bfloat16),
                dimension_numbers=(((0,), (0,)), ((), ())),
                preferred_element_type=jnp.float32)          # (C, N) fp32
            return carry

        lax.fori_loop(0, T, tile_body, 0, unroll=unroll)

        # ---- finalize: output 1x1 conv is already folded in ---------------
        out = sa_acc[...] + bv_ref[...]
        out_ref[...] = (gamma_ref[0, 0] * out).astype(out_ref.dtype)

    return kernel


def _device_kind():
    try:
        return jax.devices()[0].device_kind.lower()
    except Exception:
        return ""


def self_attention_pallas(x, params):
    """x: (B, C, W, H) float32 NCHW; params: dict from init_params."""
    B, C, W, H = x.shape
    N = W * H
    C8 = params["wf"].shape[0]
    # Pad the f/g bottleneck-channel count to the bf16 native sublane tile
    # (16) so static slices of the fused f/g scratch are tile aligned.
    C8p = max(16, ((C8 + 15) // 16) * 16)

    def pad_rows(a):
        return jnp.pad(a, ((0, C8p - a.shape[0]), (0, 0)))

    # Fused f/g projection (zero padding rows keep the math exact).
    w_fg = jnp.concatenate([pad_rows(params["wf"]), pad_rows(params["wg"])],
                           axis=0).astype(jnp.bfloat16)            # (2*C8p, C)
    b_fg = jnp.concatenate([pad_rows(params["bf"]), pad_rows(params["bg"])],
                           axis=0).astype(jnp.float32)             # (2*C8p, 1)

    # Fold the output 1x1 conv (Wv) into the h path:  hh = (Wv Wh) x + (Wv bh).
    # The weight is passed transposed so the kernel's combined projection is
    # an axis-0 contraction and hh lands directly in (N, C) layout.
    w_vhT = jnp.dot(params["wv"], params["wh"]).T.astype(jnp.bfloat16)  # (C, C)
    b_vh = jnp.dot(params["wv"], params["bh"]).reshape(1, C).astype(jnp.float32)
    bv = params["bv"].astype(jnp.float32)                               # (C, 1)
    gamma = params["gamma"].astype(jnp.float32)                         # (1, 1)

    kind = _device_kind()
    old_gen = any(t in kind for t in ("v2", "v3", "v4", "v5"))
    # bf16 exp on v6e / v7x (bf16 EUP); keep fp32 exp on older generations.
    exp_dtype = jnp.float32 if old_gen else jnp.bfloat16

    # Query-row tile size (bounds the live (TN, N) score slab).
    if (not old_gen) and N % 256 == 0 and N >= 512:
        TN = 256                      # matches the 256-wide MXU on v6e/v7x
    elif N % 128 == 0 and N >= 256:
        TN = 128
    else:
        TN = N                        # small spatial extents: single tile
    T = N // TN

    x_flat = x.reshape(B, C, N).astype(jnp.bfloat16)   # halve x DMA / VMEM

    # VMEM footprint -> limit (cap at 48 MiB so v7x keeps headroom).
    vmem_needed = (
        2 * C * N * 2                        # x block (bf16, double-buffered)
        + 2 * C * N * 4                      # out block (fp32, double-buffered)
        + (2 * C8p) * N * 2                  # f/g scratch
        + N * max(C, 128) * 2                # hh scratch (lane padded)
        + C * N * 4                          # accumulator
        + TN * N * 10                        # score slab + exp + temporaries
        + (2 * C8p + C) * C * 4 + (1 << 16)  # weights / biases / slack
    )
    vmem_limit = max(16 << 20, min(int(vmem_needed * 1.5) + (4 << 20), 48 << 20))

    flops = int(B * (2 * (2 * C8p) * C * N       # fused f/g projection
                     + 2 * C * C * N             # combined (Wv Wh) projection
                     + 2 * C8p * N * N           # f^T g scores
                     + 2 * C * N * N))           # h @ attn accumulate
    cost = pl.CostEstimate(
        flops=flops,
        transcendentals=int(B * N * N),
        bytes_accessed=int(B * C * N * (2 + 4)
                           + 2 * (2 * C8p + C) * C + 4 * (2 * C8p + 2 * C + 1)))

    def full_spec(a):
        return pl.BlockSpec(a.shape, lambda b, _nd=a.ndim: (0,) * _nd)

    out_flat = pl.pallas_call(
        _make_kernel(C, C8p, N, TN, T, exp_dtype, unroll=(T <= 8)),
        out_shape=jax.ShapeDtypeStruct((B, C, N), jnp.float32),
        grid=(B,),
        in_specs=[
            pl.BlockSpec((None, C, N), lambda b: (b, 0, 0)),  # x (batch squeezed)
            full_spec(w_fg), full_spec(b_fg),                 # fused f/g projection
            full_spec(w_vhT), full_spec(b_vh),                # folded Wv.Wh projection
            full_spec(bv),                                    # output bias
            pl.BlockSpec(memory_space=pltpu.SMEM),            # gamma scalar
        ],
        out_specs=pl.BlockSpec((None, C, N), lambda b: (b, 0, 0)),
        scratch_shapes=[
            pltpu.VMEM((2 * C8p, N), jnp.bfloat16),   # [f; g]
            pltpu.VMEM((N, C), jnp.bfloat16),         # (Wv Wh x + Wv bh)^T
            pltpu.VMEM((C, N), jnp.float32),          # attention accumulator
        ],
        compiler_params=pltpu.CompilerParams(
            dimension_semantics=("parallel",),        # batch shards over TCs (megacore)
            vmem_limit_bytes=vmem_limit),
        cost_estimate=cost,
    )(x_flat, w_fg, b_fg, w_vhT, b_vh, bv, gamma)

    return out_flat.reshape(B, C, W, H)


def init_params(key, in_channel):
    """Deterministic parameter init mirroring the PyTorch __init__ shapes.
    f/g/h: xavier_uniform weights, zero bias; v: default-conv-style uniform."""
    C = in_channel
    C8 = in_channel // 8
    k_f, k_g, k_h, k_vw, k_vb = jax.random.split(key, 5)

    def xavier(k, fan_out, fan_in):
        bound = math.sqrt(6.0 / (fan_in + fan_out))
        return jax.random.uniform(k, (fan_out, fan_in), jnp.float32, -bound, bound)

    bound_v = 1.0 / math.sqrt(C8)  # default Conv2d init bound (fan_in = C8)
    params = {
        "wf": xavier(k_f, C8, C), "bf": jnp.zeros((C8, 1), jnp.float32),
        "wg": xavier(k_g, C8, C), "bg": jnp.zeros((C8, 1), jnp.float32),
        "wh": xavier(k_h, C8, C), "bh": jnp.zeros((C8, 1), jnp.float32),
        "wv": jax.random.uniform(k_vw, (C, C8), jnp.float32, -bound_v, bound_v),
        "bv": jax.random.uniform(k_vb, (C, 1), jnp.float32, -bound_v, bound_v),
        # nn.Parameter(torch.zeros(1)) in the module; nonzero deterministic
        # value here so the test exercises the full compute path.
        "gamma": jnp.full((1, 1), 0.5, jnp.float32),
    }
    return params


def self_attention_ref(x, p):
    """Pure-JAX fp32 reference identical to the PyTorch forward."""
    B, C, W, H = x.shape
    N = W * H
    xf = x.reshape(B, C, N)
    f = jnp.einsum("oc,bcn->bon", p["wf"], xf) + p["bf"][None]
    g = jnp.einsum("oc,bcn->bon", p["wg"], xf) + p["bg"][None]
    h = jnp.einsum("oc,bcn->bon", p["wh"], xf) + p["bh"][None]
    attn = jax.nn.softmax(jnp.einsum("bcn,bcm->bnm", f, g), axis=-1)
    sa = jnp.einsum("bcn,bnm->bcm", h, attn)
    out = jnp.einsum("oc,bcn->bon", p["wv"], sa) + p["bv"][None]
    return (p["gamma"][0, 0] * out).reshape(B, C, W, H)


if __name__ == "__main__":
    key = jax.random.PRNGKey(0)
    k_x, k_p = jax.random.split(key)

    B, C, W, H = 2, 32, 16, 16        # in_channel=32 -> C//8 = 4, N = 256 (2 query tiles)
    x = jax.random.normal(k_x, (B, C, W, H), jnp.float32)
    params = init_params(k_p, C)

    out = jax.block_until_ready(self_attention_pallas(x, params))
    ref = self_attention_ref(x, params)

    assert out.shape == (B, C, W, H)
    # bf16 MXU operands / bf16 exp (fp32 accumulation and softmax statistics):
    # allow a few percent of the output dynamic range vs the fp32 reference.
    err = float(jnp.max(jnp.abs(out - ref)) / (jnp.max(jnp.abs(ref)) + 1e-6))
    assert err < 5e-2, f"max normalized error too large: {err}"
    print("KERNEL_OK")
</pallas_src>

<mosaic_0001>
module attributes {stable_mosaic.version = 11 : i64} {
  func.func @kernel(%arg0: i32, %arg1: memref<1x32x256xbf16, #tpu.memory_space<vmem>>, %arg2: memref<32x32xbf16, #tpu.memory_space<vmem>>, %arg3: memref<32x1xf32, #tpu.memory_space<vmem>>, %arg4: memref<32x32xbf16, #tpu.memory_space<vmem>>, %arg5: memref<1x32xf32, #tpu.memory_space<vmem>>, %arg6: memref<32x1xf32, #tpu.memory_space<vmem>>, %arg7: memref<1x1xf32, #tpu.memory_space<smem>>, %arg8: memref<1x32x256xf32, #tpu.memory_space<vmem>>, %arg9: memref<32x256xbf16, #tpu.memory_space<vmem>>, %arg10: memref<256x32xbf16, #tpu.memory_space<vmem>>, %arg11: memref<32x256xf32, #tpu.memory_space<vmem>>) attributes {dimension_semantics = [#tpu.dimension_semantics<parallel>], iteration_bounds = array<i64: 2>, scalar_prefetch = 0 : i64, scratch_operands = 3 : i64, tpu.core_type = #tpu.core_type<tc>, window_params = [{transform_indices = @transform_0, window_bounds = array<i64: 1, 32, 256>}, {pipeline_mode = #tpu.pipeline_mode<synchronous>, transform_indices = @transform_1, window_bounds = array<i64: 32, 32>}, {pipeline_mode = #tpu.pipeline_mode<synchronous>, transform_indices = @transform_2, window_bounds = array<i64: 32, 1>}, {pipeline_mode = #tpu.pipeline_mode<synchronous>, transform_indices = @transform_3, window_bounds = array<i64: 32, 32>}, {pipeline_mode = #tpu.pipeline_mode<synchronous>, transform_indices = @transform_4, window_bounds = array<i64: 1, 32>}, {pipeline_mode = #tpu.pipeline_mode<synchronous>, transform_indices = @transform_5, window_bounds = array<i64: 32, 1>}, {transform_indices = @transform_6, window_bounds = array<i64: 1, 1>}, {transform_indices = @transform_7, window_bounds = array<i64: 1, 32, 256>}]} {
    %c0 = arith.constant 0 : index
    %c0_0 = arith.constant 0 : index
    %c0_1 = arith.constant 0 : index
    %0 = vector.load %arg1[%c0, %c0_0, %c0_1] : memref<1x32x256xbf16, #tpu.memory_space<vmem>>, vector<1x32x256xbf16>
    %1 = vector.shape_cast %0 : vector<1x32x256xbf16> to vector<32x256xbf16>
    %c0_2 = arith.constant 0 : index
    %c0_3 = arith.constant 0 : index
    %2 = vector.load %arg2[%c0_2, %c0_3] : memref<32x32xbf16, #tpu.memory_space<vmem>>, vector<32x32xbf16>
    %cst = arith.constant dense<0.000000e+00> : vector<32x256xf32>
    %3 = tpu.matmul %2, %1, %cst {dimension_numbers = #tpu.dot_dimension_numbers<[1], [0], [0], [1], [0, 0, 1, 1], [], []>} : vector<32x32xbf16>, vector<32x256xbf16>, vector<32x256xf32> -> vector<32x256xf32>
    %c0_4 = arith.constant 0 : index
    %c0_5 = arith.constant 0 : index
    %4 = vector.load %arg3[%c0_4, %c0_5] : memref<32x1xf32, #tpu.memory_space<vmem>>, vector<32x1xf32>
    %5 = vector.broadcast %4 : vector<32x1xf32> to vector<32x256xf32>
    %6 = arith.addf %3, %5 : vector<32x256xf32>
    %7 = arith.truncf %6 : vector<32x256xf32> to vector<32x256xbf16>
    %c0_6 = arith.constant 0 : index
    %c0_7 = arith.constant 0 : index
    %8 = vector.load %arg9[%c0_6, %c0_7] : memref<32x256xbf16, #tpu.memory_space<vmem>>, vector<32x256xbf16>
    tpu.vector_store %arg9[%c0_6, %c0_7], %7 {strides = array<i32>} : memref<32x256xbf16, #tpu.memory_space<vmem>>, vector<32x256xbf16>,
    %c0_8 = arith.constant 0 : index
    %c0_9 = arith.constant 0 : index
    %9 = vector.load %arg4[%c0_8, %c0_9] : memref<32x32xbf16, #tpu.memory_space<vmem>>, vector<32x32xbf16>
    %cst_10 = arith.constant dense<0.000000e+00> : vector<256x32xf32>
    %10 = tpu.matmul %1, %9, %cst_10 {dimension_numbers = #tpu.dot_dimension_numbers<[0], [0], [1], [1], [0, 1, 1, 1], [], []>} : vector<32x256xbf16>, vector<32x32xbf16>, vector<256x32xf32> -> vector<256x32xf32>
    %c0_11 = arith.constant 0 : index
    %c0_12 = arith.constant 0 : index
    %11 = vector.load %arg5[%c0_11, %c0_12] : memref<1x32xf32, #tpu.memory_space<vmem>>, vector<1x32xf32>
    %12 = vector.broadcast %11 : vector<1x32xf32> to vector<256x32xf32>
    %13 = arith.addf %10, %12 : vector<256x32xf32>
    %14 = arith.truncf %13 : vector<256x32xf32> to vector<256x32xbf16>
    %c0_13 = arith.constant 0 : index
    %c0_14 = arith.constant 0 : index
    %15 = vector.load %arg10[%c0_13, %c0_14] : memref<256x32xbf16, #tpu.memory_space<vmem>>, vector<256x32xbf16>
    tpu.vector_store %arg10[%c0_13, %c0_14], %14 {strides = array<i32>} : memref<256x32xbf16, #tpu.memory_space<vmem>>, vector<256x32xbf16>,
    %cst_15 = arith.constant 0.000000e+00 : f32
    %16 = vector.broadcast %cst_15 : f32 to vector<32x256xf32>
    %c0_16 = arith.constant 0 : index
    %c0_17 = arith.constant 0 : index
    %17 = vector.load %arg11[%c0_16, %c0_17] : memref<32x256xf32, #tpu.memory_space<vmem>>, vector<32x256xf32>
    tpu.vector_store %arg11[%c0_16, %c0_17], %16 {strides = array<i32>} : memref<32x256xf32, #tpu.memory_space<vmem>>, vector<32x256xf32>,
    %c0_i32 = arith.constant 0 : i32
    %c128_i32 = arith.constant 128 : i32
    %18 = arith.muli %c0_i32, %c128_i32 : i32
    %19 = tpu.assume_multiple %18, 128 : i32
    %c0_18 = arith.constant 0 : index
    %20 = arith.index_cast %19 : i32 to index
    %21 = vector.load %arg9[%c0_18, %20] : memref<32x256xbf16, #tpu.memory_space<vmem>>, vector<16x128xbf16>
    %c16 = arith.constant 16 : index
    %c0_19 = arith.constant 0 : index
    %22 = vector.load %arg9[%c16, %c0_19] : memref<32x256xbf16, #tpu.memory_space<vmem>>, vector<16x256xbf16>
    %cst_20 = arith.constant dense<0.000000e+00> : vector<128x256xf32>
    %23 = tpu.matmul %21, %22, %cst_20 {dimension_numbers = #tpu.dot_dimension_numbers<[0], [0], [1], [1], [0, 1, 1, 1], [], []>} : vector<16x128xbf16>, vector<16x256xbf16>, vector<128x256xf32> -> vector<128x256xf32>
    %cst_21 = arith.constant dense<0xFF800000> : vector<128xf32>
    %24 = vector.multi_reduction <maximumf>, %23, %cst_21 [1] : vector<128x256xf32> to vector<128xf32>
    %25 = vector.shape_cast %24 : vector<128xf32> to vector<128x1xf32>
    %26 = vector.broadcast %25 : vector<128x1xf32> to vector<128x256xf32>
    %27 = arith.subf %23, %26 : vector<128x256xf32>
    %28 = arith.truncf %27 : vector<128x256xf32> to vector<128x256xbf16>
    %29 = math.exp %28 : vector<128x256xbf16>
    %30 = arith.extf %29 : vector<128x256xbf16> to vector<128x256xf32>
    %cst_22 = arith.constant dense<0.000000e+00> : vector<128xf32>
    %31 = vector.multi_reduction <add>, %30, %cst_22 [1] : vector<128x256xf32> to vector<128xf32>
    %32 = vector.shape_cast %31 : vector<128xf32> to vector<128x1xf32>
    %33 = tpu.reciprocal %32 {approx = true} : vector<128x1xf32> -> vector<128x1xf32>
    %34 = arith.index_cast %19 : i32 to index
    %c0_23 = arith.constant 0 : index
    %35 = vector.load %arg10[%34, %c0_23] : memref<256x32xbf16, #tpu.memory_space<vmem>>, vector<128x32xbf16>
    %36 = arith.extf %35 : vector<128x32xbf16> to vector<128x32xf32>
    %37 = vector.broadcast %33 : vector<128x1xf32> to vector<128x32xf32>
    %38 = arith.mulf %36, %37 : vector<128x32xf32>
    %39 = arith.truncf %38 : vector<128x32xf32> to vector<128x32xbf16>
    %c0_24 = arith.constant 0 : index
    %c0_25 = arith.constant 0 : index
    %40 = vector.load %arg11[%c0_24, %c0_25] : memref<32x256xf32, #tpu.memory_space<vmem>>, vector<32x256xf32>
    %cst_26 = arith.constant dense<0.000000e+00> : vector<32x256xf32>
    %41 = tpu.matmul %39, %29, %cst_26 {dimension_numbers = #tpu.dot_dimension_numbers<[0], [0], [1], [1], [0, 1, 1, 1], [], []>} : vector<128x32xbf16>, vector<128x256xbf16>, vector<32x256xf32> -> vector<32x256xf32>
    %42 = arith.addf %40, %41 : vector<32x256xf32>
    %c0_27 = arith.constant 0 : index
    %c0_28 = arith.constant 0 : index
    %43 = vector.load %arg11[%c0_27, %c0_28] : memref<32x256xf32, #tpu.memory_space<vmem>>, vector<32x256xf32>
    tpu.vector_store %arg11[%c0_27, %c0_28], %42 {strides = array<i32>} : memref<32x256xf32, #tpu.memory_space<vmem>>, vector<32x256xf32>,
    %c1_i32 = arith.constant 1 : i32
    %c128_i32_29 = arith.constant 128 : i32
    %44 = arith.muli %c1_i32, %c128_i32_29 : i32
    %45 = tpu.assume_multiple %44, 128 : i32
    %c0_30 = arith.constant 0 : index
    %46 = arith.index_cast %45 : i32 to index
    %47 = vector.load %arg9[%c0_30, %46] : memref<32x256xbf16, #tpu.memory_space<vmem>>, vector<16x128xbf16>
    %c16_31 = arith.constant 16 : index
    %c0_32 = arith.constant 0 : index
    %48 = vector.load %arg9[%c16_31, %c0_32] : memref<32x256xbf16, #tpu.memory_space<vmem>>, vector<16x256xbf16>
    %cst_33 = arith.constant dense<0.000000e+00> : vector<128x256xf32>
    %49 = tpu.matmul %47, %48, %cst_33 {dimension_numbers = #tpu.dot_dimension_numbers<[0], [0], [1], [1], [0, 1, 1, 1], [], []>} : vector<16x128xbf16>, vector<16x256xbf16>, vector<128x256xf32> -> vector<128x256xf32>
    %cst_34 = arith.constant dense<0xFF800000> : vector<128xf32>
    %50 = vector.multi_reduction <maximumf>, %49, %cst_34 [1] : vector<128x256xf32> to vector<128xf32>
    %51 = vector.shape_cast %50 : vector<128xf32> to vector<128x1xf32>
    %52 = vector.broadcast %51 : vector<128x1xf32> to vector<128x256xf32>
    %53 = arith.subf %49, %52 : vector<128x256xf32>
    %54 = arith.truncf %53 : vector<128x256xf32> to vector<128x256xbf16>
    %55 = math.exp %54 : vector<128x256xbf16>
    %56 = arith.extf %55 : vector<128x256xbf16> to vector<128x256xf32>
    %cst_35 = arith.constant dense<0.000000e+00> : vector<128xf32>
    %57 = vector.multi_reduction <add>, %56, %cst_35 [1] : vector<128x256xf32> to vector<128xf32>
    %58 = vector.shape_cast %57 : vector<128xf32> to vector<128x1xf32>
    %59 = tpu.reciprocal %58 {approx = true} : vector<128x1xf32> -> vector<128x1xf32>
    %60 = arith.index_cast %45 : i32 to index
    %c0_36 = arith.constant 0 : index
    %61 = vector.load %arg10[%60, %c0_36] : memref<256x32xbf16, #tpu.memory_space<vmem>>, vector<128x32xbf16>
    %62 = arith.extf %61 : vector<128x32xbf16> to vector<128x32xf32>
    %63 = vector.broadcast %59 : vector<128x1xf32> to vector<128x32xf32>
    %64 = arith.mulf %62, %63 : vector<128x32xf32>
    %65 = arith.truncf %64 : vector<128x32xf32> to vector<128x32xbf16>
    %c0_37 = arith.constant 0 : index
    %c0_38 = arith.constant 0 : index
    %66 = vector.load %arg11[%c0_37, %c0_38] : memref<32x256xf32, #tpu.memory_space<vmem>>, vector<32x256xf32>
    %cst_39 = arith.constant dense<0.000000e+00> : vector<32x256xf32>
    %67 = tpu.matmul %65, %55, %cst_39 {dimension_numbers = #tpu.dot_dimension_numbers<[0], [0], [1], [1], [0, 1, 1, 1], [], []>} : vector<128x32xbf16>, vector<128x256xbf16>, vector<32x256xf32> -> vector<32x256xf32>
    %68 = arith.addf %66, %67 : vector<32x256xf32>
    %c0_40 = arith.constant 0 : index
    %c0_41 = arith.constant 0 : index
    %69 = vector.load %arg11[%c0_40, %c0_41] : memref<32x256xf32, #tpu.memory_space<vmem>>, vector<32x256xf32>
    tpu.vector_store %arg11[%c0_40, %c0_41], %68 {strides = array<i32>} : memref<32x256xf32, #tpu.memory_space<vmem>>, vector<32x256xf32>,
    %c2_i32 = arith.constant 2 : i32
    %c0_42 = arith.constant 0 : index
    %c0_43 = arith.constant 0 : index
    %70 = vector.load %arg11[%c0_42, %c0_43] : memref<32x256xf32, #tpu.memory_space<vmem>>, vector<32x256xf32>
    %c0_44 = arith.constant 0 : index
    %c0_45 = arith.constant 0 : index
    %71 = vector.load %arg6[%c0_44, %c0_45] : memref<32x1xf32, #tpu.memory_space<vmem>>, vector<32x1xf32>
    %72 = vector.broadcast %71 : vector<32x1xf32> to vector<32x256xf32>
    %73 = arith.addf %70, %72 : vector<32x256xf32>
    %c0_46 = arith.constant 0 : index
    %c0_47 = arith.constant 0 : index
    %74 = memref.load %arg7[%c0_46, %c0_47] : memref<1x1xf32, #tpu.memory_space<smem>>
    %75 = vector.broadcast %74 : f32 to vector<32x256xf32>
    %76 = arith.mulf %75, %73 : vector<32x256xf32>
    %c0_48 = arith.constant 0 : index
    %c0_49 = arith.constant 0 : index
    %c0_50 = arith.constant 0 : index
    %77 = vector.load %arg8[%c0_48, %c0_49, %c0_50] : memref<1x32x256xf32, #tpu.memory_space<vmem>>, vector<1x32x256xf32>
    %78 = vector.shape_cast %77 : vector<1x32x256xf32> to vector<32x256xf32>
    %79 = vector.shape_cast %76 : vector<32x256xf32> to vector<1x32x256xf32>
    tpu.vector_store %arg8[%c0_48, %c0_49, %c0_50], %79 {strides = array<i32>} : memref<1x32x256xf32, #tpu.memory_space<vmem>>, vector<1x32x256xf32>,
    return
  }
  func.func @transform_0(%arg0: i32) -> (i32, i32, i32) {
    %c0_i32 = arith.constant 0 : i32
    %c0_i32_0 = arith.constant 0 : i32
    %c0_i32_1 = arith.constant 0 : i32
    return %arg0, %c0_i32, %c0_i32_0 : i32, i32, i32
  }
  func.func @transform_1(%arg0: i32) -> (i32, i32) {
    %c0_i32 = arith.constant 0 : i32
    %c0_i32_0 = arith.constant 0 : i32
    %c0_i32_1 = arith.constant 0 : i32
    return %c0_i32, %c0_i32_0 : i32, i32
  }
  func.func @transform_2(%arg0: i32) -> (i32, i32) {
    %c0_i32 = arith.constant 0 : i32
    %c0_i32_0 = arith.constant 0 : i32
    %c0_i32_1 = arith.constant 0 : i32
    return %c0_i32, %c0_i32_0 : i32, i32
  }
  func.func @transform_3(%arg0: i32) -> (i32, i32) {
    %c0_i32 = arith.constant 0 : i32
    %c0_i32_0 = arith.constant 0 : i32
    %c0_i32_1 = arith.constant 0 : i32
    return %c0_i32, %c0_i32_0 : i32, i32
  }
  func.func @transform_4(%arg0: i32) -> (i32, i32) {
    %c0_i32 = arith.constant 0 : i32
    %c0_i32_0 = arith.constant 0 : i32
    %c0_i32_1 = arith.constant 0 : i32
    return %c0_i32, %c0_i32_0 : i32, i32
  }
  func.func @transform_5(%arg0: i32) -> (i32, i32) {
    %c0_i32 = arith.constant 0 : i32
    %c0_i32_0 = arith.constant 0 : i32
    %c0_i32_1 = arith.constant 0 : i32
    return %c0_i32, %c0_i32_0 : i32, i32
  }
  func.func @transform_6(%arg0: i32) -> (i32, i32) {
    %c0_i32 = arith.constant 0 : i32
    %c0_i32_0 = arith.constant 0 : i32
    %c0_i32_1 = arith.constant 0 : i32
    return %c0_i32, %c0_i32_0 : i32, i32
  }
  func.func @transform_7(%arg0: i32) -> (i32, i32, i32) {
    %c0_i32 = arith.constant 0 : i32
    %c0_i32_0 = arith.constant 0 : i32
    %c0_i32_1 = arith.constant 0 : i32
    return %arg0, %c0_i32, %c0_i32_0 : i32, i32, i32
  }
}

</mosaic_0001>

<bundles_post_ra>
// kernel: tpu_custom_call.1
= control target key start
LH: loop header
LB: loop body
LE: loop exit
PB: predicated region body
PF: predicated region fallthrough
CT: control target
= control target key end

     0   :  { %s3128_s0 = inlined_call_operand.vmem [shape: bf16[2,32,256], index: 0, kind: input, shape index: {}]   ;;  %s3129_s1 = inlined_call_operand.hbm [shape: bf16[32,32], index: 1, kind: input, shape index: {}]   ;;  %s3130_s2 = inlined_call_operand.vmem [shape: f32[32,1], index: 2, kind: input, shape index: {}]   ;;  %s3131_s3 = inlined_call_operand.hbm [shape: bf16[32,32], index: 3, kind: input, shape index: {}]   ;;  %s3132_s4 = inlined_call_operand.vmem [shape: f32[1,32], index: 4, kind: input, shape index: {}]   ;;  %s3133_s5 = inlined_call_operand.vmem [shape: f32[32,1], index: 5, kind: input, shape index: {}]   ;;  %s3134_s6 = inlined_call_operand.<no memory space> [shape: f32[1,1], index: 6, kind: input, shape index: {}]   ;;  %s3135_s7 = inlined_call_operand.hbm [shape: f32[2,32,256], index: 7, kind: output, shape index: {}]  }
   0x1   :  { %12 = sst [smem:[#allocation5]] %s3134_s6 }
   0x2   :  { %13 = vsyncpa [#allocation7], 0 }
   0x3   :  { %14 = vsyncpa [#allocation10], 0 }
   0x4   :  { %15 = vsyncpa [#allocation8], 0 }
   0x5   :  { %17 = vsyncpa [#allocation8 + $0x1], 0  ;;  %s2483_s26 = smov 0   ;;  %s2485_s27 = smov 0  }
   0x6   :  { %s2487_s28 = smov 0   ;;  %s2489_s29 = smov 0  }
   0x7 LB: > { %s2504_s6 = sadd.s32 4294967295, %s2430_s29   ;;  %s1976_s30 = sadd.s32 4294967294, %s2430_s29   ;;  %s2430_s29 = sphi %s2489_s29, %s3201_s29   ;;  %s2426_s28 = sphi %s2487_s28, %s3200_s28   ;;  %s2422_s27 = sphi %s2485_s27, %s3199_s27   ;;  %s2418_s26 = sphi %s2483_s26, %s3198_s26  }
   0x8   : > { %s2508_s8 = sadd.s32 1, %s2430_s29   ;;  %s182_s9 = sadd.s32 1, %s2426_s28 }
   0x9   : > { %s179_s10 = ssub.s32 %s2430_s29, %s2508_s8  ;;  %p192_p0 = scmp.ne.s32.totalorder %s2426_s28, %s2422_s27 }
   0xa   : > { %p180_p1 = scmp.eq.s32.totalorder %s179_s10, 0  ;;  %p193_p2 = scmp.eq.s32.totalorder %s2504_s6, 1 }
   0xb   : > { %p198_p3 = scmp.ne.s32.totalorder %s2422_s27, %s2418_s26  ;;  %p199_p4 = scmp.eq.s32.totalorder %s1976_s30, 1 }
   0xc   : > { %s2519_s11 = scalar_select %p180_p1, %s2426_s28, %s182_s9  }
   0xd   : > { %p2521_p5 = por %p193_p2, %p192_p0  ;;  %p2525_p6 = por %p199_p4, %p198_p3 }
   0xe   : > { %p1977_p7 = scmp.ge.s32.totalorder %s2430_s29, 1  ;;  %p206_p8 = scmp.lt.s32.totalorder %s2430_s29, 3 }
   0xf   : > { %s3156_s12 = scalar_select %p2521_p5, 1, 0 }
  0x10   : > { %s3157_s13 = scalar_select %p2525_p6, 1, 0 }
  0x11   : > { %p3136_p9 = scmp.eq.s32.totalorder %s2504_s6, 0  ;;  %p2532_p10 = pnand %p1977_p7, %p206_p8 }
  0x12   : > { %s2432_s15 = smov [#allocation6]   ;;  %s2433_s18 = smov [#allocation9]  }
  0x13   : > { %s3158_s14 = scalar_select %p2532_p10, 1, 0 }
  0x14   : > { %s218_s16 = sshll.u32 %s2432_s15, 4  ;;  %p2109_p11 = pneg %p2532_p10  ;;  %s219_s16 = int_to_ptr.vmem [resolvable:$true] %s218_s16 }
  0x15   : > { %s234_s19 = sshll.u32 %s2433_s18, 4  ;;  %s2304_s22 = scalar_lea.hbm %s3129_s1, 256  ;;  %s2544_s19 = int_to_ptr.vmem [resolvable:$true] %s234_s19 }
  0x16   : > { %p2540_p12 = pnand %p3136_p9, %p2109_p11  ;;  %p2305_p13 = scmp.ne.s32.totalorder %s3129_s1, %s2304_s22 }
  0x17   : > { %p2311_p3 = scmp.lt.u32.totalorder %s2304_s22, %s3129_s1 }
  0x18   : > { %p2306_p0 = pneg %p2540_p12 }
  0x1a   : > { %p2307_p1 = pnand %p2306_p0, %p2305_p13 }
  0x1c   : > { %p2308_p2 = pneg %p2307_p1 }
  0x1e   : > { %p2313_p4 = pnand %p2311_p3, %p2308_p2 }
  0x20   : > { %2316 = shalt.err (!%p2313_p4)
}
  0x21   : > { %s2317_s9 = scalar_lea.vmem %s219_s16, 256  ;;  %p2325_p9 = scmp.lt.s32.totalorder %s219_s16, %s219_s16 }
  0x22   : > { %p2318_p7 = scmp.ne.s32.totalorder %s219_s16, %s2317_s9  ;;  %p2326_p6 = scmp.lt.s32.totalorder %s2317_s9, %s2317_s9 }
  0x24   : > { %p2320_p8 = pnand %p2318_p7, %p2306_p0  ;;  %p2327_p5 = por %p2326_p6, %p2325_p9 }
  0x26   : > { %p2321_p11 = pneg %p2320_p8 }
  0x28   : > { %p2328_p10 = pnand %p2327_p5, %p2321_p11 }
  0x2a   : > { %2331 = shalt.err (!%p2328_p10)
}
  0x2b   : > { %s2434_s10 = smov 64   ;;  %s2435_s15 = smov 4  }
  0x2c   : > { %2112 = dma.hbm_to_vmem [thread:$0]  (!%p2540_p12), %s3129_s1, 256, %s219_s16, [#allocation7], %s2434_s10, %s2434_s10, %s2435_s15  }
  0x2d   : > { %s2332_s23 = scalar_lea.hbm %s3131_s3, 256 }
  0x2e   : > { %p2333_p13 = scmp.ne.s32.totalorder %s3131_s3, %s2332_s23  ;;  %p2339_p9 = scmp.lt.u32.totalorder %s2332_s23, %s3131_s3 }
  0x30   : > { %p2335_p5 = pnand %p2333_p13, %p2306_p0 }
  0x32   : > { %p2336_p6 = pneg %p2335_p5 }
  0x34   : > { %p2341_p10 = pnand %p2339_p9, %p2336_p6 }
  0x36   : > { %2344 = shalt.err (!%p2341_p10)
}
  0x37   : > { %s2345_s16 = scalar_lea.vmem %s2544_s19, 256  ;;  %p2353_p4 = scmp.lt.s32.totalorder %s2544_s19, %s2544_s19 }
  0x38   : > { %p2346_p1 = scmp.ne.s32.totalorder %s2544_s19, %s2345_s16  ;;  %p2354_p7 = scmp.lt.s32.totalorder %s2345_s16, %s2345_s16 }
  0x3a   : > { %p2348_p2 = pnand %p2346_p1, %p2306_p0  ;;  %p2355_p8 = por %p2354_p7, %p2353_p4 }
  0x3c   : > { %p2349_p3 = pneg %p2348_p2 }
  0x3e   : > { %p2356_p11 = pnand %p2355_p8, %p2349_p3 }
  0x40   : > { %2359 = shalt.err (!%p2356_p11)
}
  0x41   : > { %2115 = dma.hbm_to_vmem [thread:$0]  (!%p2540_p12), %s3131_s3, 256, %s2544_s19, [#allocation10], %s2434_s10, %s2434_s10, %s2435_s15  }
  0x42   : > { %p3160_p13 = scmp.ne.s32.totalorder %s3158_s14, 0 }
  0x44   : > { %267 = sbr.rel (%p3160_p13) target bundleno = 1395 (0x573), region = 48 }
  0x4b   : > { %p3161_p5 = scmp.eq.s32.totalorder %s2504_s6, 0 }
  0x4d   : > { %2405 = dma.done.wait (%p3161_p5), [#allocation7], 256   ;;  %p3162_p0 = pmov %p3161_p5 }
  0x4f   : > { %2407 = vsyncadd (%p3162_p0), [#allocation7], 4294967040  ;;  %p3163_p6 = pmov %p3162_p0 }
  0x50   : > { %p3164_p9 = pmov %p3162_p0 }
  0x51   : > { %2409 = dma.done.wait (%p3163_p6), [#allocation10], 256  }
  0x52   : > { %2411 = vsyncadd (%p3164_p9), [#allocation10], 4294967040  ;;  %p303_p10 = scmp.lt.s32.totalorder %s2504_s6, 1  ;;  %v3139_v0 = vmov 0   ;;  %v317_v5 = vld [vmem:[%s3130_s2] sm:$0xff]  ;;  %v318_v7 = vld [vmem:[%s3130_s2 + $0x8] sm:$0xff] }
  0x53   : > { %410 = vmatprep.mubr.bf16.mxu1 %v3139_v0  ;;  %2164 = vset.pattern.permute.xlu0 %v3139_v0  ;;  %v2172_v6 = vld [vmem:[#allocation6] sm:$0xff]   ;;  %v319_v8 = vld [vmem:[%s3130_s2 + $0x10] sm:$0xff]  ;;  %vm371_vm0 = vcmask 261120   ;;  %v320_v9 = vld [vmem:[%s3130_s2 + $0x18] sm:$0xff]  ;;  %vm762_vm1 = vcmask 130048   ;;  %s1860_s24 = sld [smem:[#allocation5]] }
  0x54   : > { %s304_s14 = scalar_select %p303_p10, %s2504_s6, 1  ;;  %2165 = vset.pattern.permute.xlu1 %v3139_v0  ;;  %819 = vmatprep.mubr.bf16.mxu0 %v3139_v0  ;;  %v2173_v10 = vld [vmem:[#allocation6 + $0x8] sm:$0xff]   ;;  %v2174_v51 = vld [vmem:[#allocation9] sm:$0xff]   ;;  %v2175_v53 = vld [vmem:[#allocation9 + $0x8] sm:$0xff]  }
  0x55   : > { %323 = vperm.xlu0 %2164, %v317_v5   ;;  %333 = vperm.xlu1 %2165, %v319_v8   ;;  %s300_s25 = sand.u32 1, %s2422_s27   ;;  %s2036_s18 = sshll.u32 %s2504_s6, 10 }
  0x56   : > { %s2035_s17 = sshll.u32 %s304_s14, 5  ;;  %s1984_s30 = sshll.u32 %s300_s25, 6 }
  0x57   : > { %s307_s15 = scalar_lea.vmem %s3128_s0, %s2035_s17  ;;  %s302_s9 = scalar_lea.vmem [#allocation11], %s1984_s30 }
  0x58   : > { %v2166_v1 = vld [vmem:[%s307_s15 + $0x4] ss:$8 sps:$4 sm:$0xff]   ;;  %v2168_v2 = vld [vmem:[%s307_s15] ss:$8 sps:$4 sm:$0xff]   ;;  %v2169_v3 = vld [vmem:[%s307_s15 + $0x14] ss:$8 sps:$4 sm:$0xff]   ;;  %s3083_s17 = scalar_lea.hbm %s3135_s7, %s2036_s18 }
  0x59   : > { %378 = vmatprep.subr.bf16.mxu1 %v2166_v1  ;;  %v2171_v4 = vld [vmem:[%s307_s15 + $0x10] ss:$8 sps:$4 sm:$0xff]   ;;  %328 = vperm.xlu0 %2164, %v318_v7   ;;  %s1892_s16 = sshll.u32 %s302_s9, 4  ;;  %s3087_s6 = scalar_lea.sflag [#allocation8], %s300_s25  ;;  %s3078_s16 = int_to_ptr.vmem [resolvable:$true] %s1892_s16 }
  0x5a   : > { %379 = vmatpush1.bf16.msra.mxu1 %v2168_v2  ;;  %338 = vperm.xlu1 %2165, %v320_v9   ;;  %s2360_s19 = scalar_lea.vmem %s3078_s16, 1024  ;;  %p3196_p1 = scmp.ne.s32.totalorder %s3156_s12, 0 }
  0x5b   : > { %380 = vmatprep.subr.bf16.mxu1 %v2169_v3  ;;  %p2361_p12 = scmp.ne.s32.totalorder %s3078_s16, %s2360_s19  ;;  %s2437_s10 = smov [#allocation11]  }
  0x5c   : > { %s2364_s15 = sshll.u32 %s2437_s10, 4  ;;  %s2365_s15 = int_to_ptr.vmem [resolvable:$false] %s2364_s15 }
  0x5d   : > { %p2362_p2 = pnand %p2361_p12, %p3196_p1  ;;  %s2366_s21 = scalar_lea.vmem %s2365_s15, 2048 }
  0x5e   : > { %381 = vmatpush1.bf16.msra.mxu1 %v2171_v4  ;;  %p2367_p4 = scmp.lt.s32.totalorder %s3078_s16, %s2365_s15  ;;  %p2368_p7 = scmp.lt.s32.totalorder %s2366_s21, %s2360_s19 }
  0x5f   : > { %2055 = vmatprep.subr.bf16.mxu1 %v2174_v51  ;;  %p2363_p3 = pneg %p2362_p2 }
  0x60   : > { %p2369_p8 = por %p2368_p7, %p2367_p4 }
  0x61   : > { %1993 = vmatmul.mubr.msk.bf16.vlgmr.msra.gmra.mrb[0].mxu1 %vm371_vm0, %v2172_v6 }
  0x62   : > { %420 = vmatprep.mubr.bf16.mxu1 %v3139_v0  ;;  %2056 = vmatpush3.bf16.msra.mxu1 %v2174_v51  ;;  %p2370_p11 = pnand %p2369_p8, %p2363_p3 }
  0x63   : > { %2057 = vmatprep.subr.bf16.mxu1 %v2175_v53 }
  0x66   : > { %2058 = vmatpush3.bf16.msra.mxu1 %v2175_v53 }
  0x69   : > { %1994 = vmatmul.mubr.msk.bf16.gmra.mrb[4].mxu1 %vm371_vm0, %v2173_v10 }
  0xd4   : > { %v324_v11 = vpop.permute.xlu0 %323  ;;  %v334_v14 = vpop.permute.xlu1 %333 }
  0xd8   : > { %v329_v15 = vpop.permute.xlu0 %328 }
  0xd9   : > { %v339_v25 = vpop.permute.xlu1 %338 }
 0x134   : > { %v412_v12 = vpop.f32.mrb[0].mxu1 }
 0x135   : > { %v414_v13 = vpop.f32.mrb[1].mxu1  ;;  %v413_v17 = vadd.f32 %v412_v12, %v324_v11 }
 0x136   : > { %v416_v16 = vpop.f32.mrb[2].mxu1  ;;  %v415_v20 = vadd.f32 %v414_v13, %v324_v11 }
 0x137   : > { %v417_v18 = vadd.f32 %v416_v16, %v329_v15  ;;  %v418_v19 = vpop.f32.mrb[3].mxu1 }
 0x138   : > { %v419_v21 = vadd.f32 %v418_v19, %v329_v15 }
 0x139   : > { %v431_v22 = vpack.c.bf16 %v417_v18, %v413_v17 }
 0x13a   : > { %v432_v23 = vpack.c.bf16 %v419_v21, %v415_v20 }
 0x13b   : > { %746 = vxpose.xlu0.c.b16.start.end [1/1] (short) %v431_v22, 128 }
 0x13c   : > { %1285 = vxpose.xlu1.c.b16.start.end [1/1] (short) %v432_v23, 128  ;;  %v422_v24 = vpop.f32.mrb[4].mxu1 }
 0x13d   : > { %v423_v26 = vadd.f32 %v422_v24, %v334_v14  ;;  %v424_v27 = vpop.f32.mrb[5].mxu1 }
 0x13e   : > { %v425_v28 = vadd.f32 %v424_v27, %v334_v14  ;;  %v426_v29 = vpop.f32.mrb[6].mxu1 }
 0x13f   : > { %v428_v30 = vpop.f32.mrb[7].mxu1  ;;  %v427_v31 = vadd.f32 %v426_v29, %v339_v25 }
 0x140   : > { %v429_v32 = vadd.f32 %v428_v30, %v339_v25 }
 0x141   : > { %v433_v33 = vpack.c.bf16 %v427_v31, %v423_v26 }
 0x142   : > { %v434_v34 = vpack.c.bf16 %v429_v32, %v425_v28 }
 0x144   : > { %787 = vmatprep.subr.bf16.mxu0 %v434_v34 }
 0x145   : > { %788 = vmatpush1.bf16.msra.mxu0 %v433_v33 }
 0x146   : > { %1325 = vmatprep.subr.bf16.mxu0 %v434_v34 }
 0x158   : > { %450 = vxpose.xlu0.c.b16.start [1/2] (short) %v2168_v2, 128 }
 0x159   : > { %466 = vxpose.xlu1.c.b16.start [1/2] (short) %v2166_v1, 128 }
 0x15c   : > { %451 = vxpose.xlu0.c.b16.end [2/2] (short) %v2171_v4, 128 }
 0x15d   : > { %467 = vxpose.xlu1.c.b16.end [2/2] (short) %v2169_v3, 128 }
 0x1a1   : > { %v754_v35 = vpop.trf.xlu0 }
 0x1a2   : > { %2014 = vmatmul.mubr.msk.bf16.vlgmr.msra.gmra.mrb[0].mxu0 %vm762_vm1, %v754_v35  ;;  %v1293_v43 = vpop.trf.xlu1 }
 0x1a3   : > { %1326 = vmatpush1.bf16.msra.mxu0 %v433_v33  ;;  %829 = vmatprep.mubr.bf16.mxu0 %v3139_v0 }
 0x1a5   : > { %v755_v36 = vpop.trf.xlu0 }
 0x1a6   : > { %v1294_v44 = vpop.trf.xlu1 }
 0x1a9   : > { %v756_v37 = vpop.trf.xlu0 }
 0x1aa   : > { %2015 = vmatmul.mubr.msk.bf16.gmra.mrb[4].mxu0 %vm762_vm1, %v755_v36  ;;  %v1295_v45 = vpop.trf.xlu1 }
 0x1ab   : > { %839 = vmatprep.mubr.bf16.mxu0 %v3139_v0 }
 0x1ad   : > { %v757_v38 = vpop.trf.xlu0 }
 0x1ae   : > { %v1296_v46 = vpop.trf.xlu1 }
 0x1b1   : > { %v758_v39 = vpop.trf.xlu0 }
 0x1b2   : > { %2016 = vmatmul.mubr.msk.bf16.gmra.mrb[8].mxu0 %vm762_vm1, %v756_v37  ;;  %v1297_v47 = vpop.trf.xlu1 }
 0x1b3   : > { %849 = vmatprep.mubr.bf16.mxu0 %v3139_v0 }
 0x1b5   : > { %v759_v40 = vpop.trf.xlu0 }
 0x1b6   : > { %v1298_v48 = vpop.trf.xlu1 }
 0x1b9   : > { %v760_v41 = vpop.trf.xlu0 }
 0x1ba   : > { %2017 = vmatmul.mubr.msk.bf16.gmra.mrb[12].mxu0 %vm762_vm1, %v757_v38  ;;  %v1299_v49 = vpop.trf.xlu1 }
 0x1bb   : > { %859 = vmatprep.mubr.bf16.mxu0 %v3139_v0 }
 0x1bd   : > { %v761_v42 = vpop.trf.xlu0 }
 0x1be   : > { %v1300_v50 = vpop.trf.xlu1 }
 0x1c1   : > { %v458_v52 = vpop.trf.xlu0 }
 0x1c2   : > { %2018 = vmatmul.mubr.msk.bf16.gmra.mrb[16].mxu0 %vm762_vm1, %v758_v39  ;;  %2059 = vmatprep.mubr.msk.bf16.mxu1 %vm371_vm0, %v458_v52  ;;  %v474_v58 = vpop.trf.xlu1 }
 0x1c3   : > { %869 = vmatprep.mubr.bf16.mxu0 %v3139_v0 }
 0x1c5   : > { %v459_v54 = vpop.trf.xlu0 }
 0x1c6   : > { %2060 = vmatmul.mubr.msk.bf16.vlgmr.msra.gmra.mrb[8].mxu1 %vm371_vm0, %v459_v54  ;;  %v475_v61 = vpop.trf.xlu1 }
 0x1c9   : > { %v460_v55 = vpop.trf.xlu0 }
 0x1ca   : > { %2019 = vmatmul.mubr.msk.bf16.gmra.mrb[20].mxu0 %vm762_vm1, %v759_v40  ;;  %2063 = vmatprep.mubr.msk.bf16.mxu1 %vm371_vm0, %v460_v55  ;;  %v476_v6 = vpop.trf.xlu1 }
 0x1cb   : > { %879 = vmatprep.mubr.bf16.mxu0 %v3139_v0 }
 0x1cd   : > { %v461_v56 = vpop.trf.xlu0 }
 0x1ce   : > { %2064 = vmatmul.mubr.msk.bf16.gmra.mrb[12].mxu1 %vm371_vm0, %v461_v56  ;;  %v477_v13 = vpop.trf.xlu1 }
 0x1d1   : > { %v462_v57 = vpop.trf.xlu0 }
 0x1d2   : > { %2020 = vmatmul.mubr.msk.bf16.gmra.mrb[24].mxu0 %vm762_vm1, %v760_v41  ;;  %2067 = vmatprep.mubr.msk.bf16.mxu1 %vm371_vm0, %v462_v57  ;;  %v478_v18 = vpop.trf.xlu1 }
 0x1d3   : > { %889 = vmatprep.mubr.bf16.mxu0 %v3139_v0 }
 0x1d5   : > { %v463_v59 = vpop.trf.xlu0 }
 0x1d6   : > { %2068 = vmatmul.mubr.msk.bf16.gmra.mrb[16].mxu1 %vm371_vm0, %v463_v59  ;;  %v479_v22 = vpop.trf.xlu1 }
 0x1d9   : > { %v464_v63 = vpop.trf.xlu0 }
 0x1da   : > { %2021 = vmatmul.mubr.msk.bf16.gmra.mrb[28].mxu0 %vm762_vm1, %v761_v42  ;;  %2071 = vmatprep.mubr.msk.bf16.mxu1 %vm371_vm0, %v464_v63  ;;  %v480_v28 = vpop.trf.xlu1 }
 0x1db   : > { %1357 = vmatprep.mubr.bf16.mxu0 %v3139_v0 }
 0x1dd   : > { %v465_v5 = vpop.trf.xlu0 }
 0x1de   : > { %2072 = vmatmul.mubr.msk.bf16.gmra.mrb[20].mxu1 %vm371_vm0, %v465_v5  ;;  %v481_v35 = vpop.trf.xlu1 }
 0x1df   : > { %2075 = vmatprep.mubr.msk.bf16.mxu1 %vm371_vm0, %v474_v58 }
 0x1e2   : > { %2022 = vmatmul.mubr.msk.bf16.vlgmr.msra.gmra.mrb[32].mxu0 %vm762_vm1, %v1293_v43 }
 0x1e3   : > { %1367 = vmatprep.mubr.bf16.mxu0 %v3139_v0 }
 0x1e6   : > { %2076 = vmatmul.mubr.msk.bf16.gmra.mrb[24].mxu1 %vm371_vm0, %v475_v61 }
 0x1e7   : > { %2079 = vmatprep.mubr.msk.bf16.mxu1 %vm371_vm0, %v476_v6 }
 0x1ea   : > { %2023 = vmatmul.mubr.msk.bf16.gmra.mrb[36].mxu0 %vm762_vm1, %v1294_v44 }
 0x1eb   : > { %1377 = vmatprep.mubr.bf16.mxu0 %v3139_v0 }
 0x1ee   : > { %2080 = vmatmul.mubr.msk.bf16.gmra.mrb[28].mxu1 %vm371_vm0, %v477_v13 }
 0x1ef   : > { %2083 = vmatprep.mubr.msk.bf16.mxu1 %vm371_vm0, %v478_v18 }
 0x1f2   : > { %2024 = vmatmul.mubr.msk.bf16.gmra.mrb[40].mxu0 %vm762_vm1, %v1295_v45 }
 0x1f3   : > { %1387 = vmatprep.mubr.bf16.mxu0 %v3139_v0 }
 0x1f6   : > { %2084 = vmatmul.mubr.msk.bf16.gmra.mrb[32].mxu1 %vm371_vm0, %v479_v22 }
 0x1f7   : > { %2087 = vmatprep.mubr.msk.bf16.mxu1 %vm371_vm0, %v480_v28 }
 0x1fa   : > { %2025 = vmatmul.mubr.msk.bf16.gmra.mrb[44].mxu0 %vm762_vm1, %v1296_v46 }
 0x1fb   : > { %1397 = vmatprep.mubr.bf16.mxu0 %v3139_v0 }
 0x1fe   : > { %2088 = vmatmul.mubr.msk.bf16.gmra.mrb[36].mxu1 %vm371_vm0, %v481_v35 }
 0x1ff   : > { %1244 = vmatprep.mubr.bf16.mxu1 %v3139_v0 }
 0x202   : > { %2026 = vmatmul.mubr.msk.bf16.gmra.mrb[48].mxu0 %vm762_vm1, %v1297_v47 }
 0x203   : > { %1407 = vmatprep.mubr.bf16.mxu0 %v3139_v0 }
 0x20a   : > { %2027 = vmatmul.mubr.msk.bf16.gmra.mrb[52].mxu0 %vm762_vm1, %v1298_v48 }
 0x20b   : > { %1417 = vmatprep.mubr.bf16.mxu0 %v3139_v0 }
 0x212   : > { %2028 = vmatmul.mubr.msk.bf16.gmra.mrb[56].mxu0 %vm762_vm1, %v1299_v49 }
 0x213   : > { %1427 = vmatprep.mubr.bf16.mxu0 %v3139_v0 }
 0x21a   : > { %2029 = vmatmul.mubr.msk.bf16.gmra.mrb[60].mxu0 %vm762_vm1, %v1300_v50 }
 0x275   : > { %v2664_v60 = vpop.f32.mrb[0].mxu0 }
 0x276   : > { %v2666_v62 = vpop.f32.mrb[1].mxu0 }
 0x277   : > { %v2668_v1 = vpop.f32.mrb[2].mxu0  ;;  %v900_v2 = vmax.f32 %v2664_v60, %v2666_v62 }
 0x278   : > { %v2673_v3 = vpop.f32.mrb[3].mxu0 }
 0x279   : > { %901 = vmax.xlane.f32.xlu0 %v900_v2  ;;  %v903_v4 = vmax.f32 %v2668_v1, %v2673_v3 }
 0x27b   : > { %904 = vmax.xlane.f32.xlu1 %v903_v4 }
 0x27d   : > { %v2679_v7 = vpop.f32.mrb[4].mxu0 }
 0x27e   : > { %v2681_v8 = vpop.f32.mrb[5].mxu0 }
 0x27f   : > { %v2683_v9 = vpop.f32.mrb[6].mxu0  ;;  %v906_v10 = vmax.f32 %v2679_v7, %v2681_v8 }
 0x280   : > { %v2687_v11 = vpop.f32.mrb[7].mxu0 }
 0x281   : > { %907 = vmax.xlane.f32.xlu0 %v906_v10  ;;  %v909_v12 = vmax.f32 %v2683_v9, %v2687_v11 }
 0x285   : > { %910 = vmax.xlane.f32.xlu0 %v909_v12  ;;  %v2693_v14 = vpop.f32.mrb[8].mxu0 }
 0x286   : > { %v2695_v15 = vpop.f32.mrb[9].mxu0 }
 0x287   : > { %v2697_v16 = vpop.f32.mrb[10].mxu0  ;;  %v912_v17 = vmax.f32 %v2693_v14, %v2695_v15 }
 0x288   : > { %v2701_v19 = vpop.f32.mrb[11].mxu0 }
 0x289   : > { %913 = vmax.xlane.f32.xlu1 %v912_v17  ;;  %v915_v20 = vmax.f32 %v2697_v16, %v2701_v19 }
 0x28b   : > { %916 = vmax.xlane.f32.xlu0 %v915_v20 }
 0x28d   : > { %v2707_v21 = vpop.f32.mrb[12].mxu0 }
 0x28e   : > { %v2709_v23 = vpop.f32.mrb[13].mxu0 }
 0x28f   : > { %v2711_v24 = vpop.f32.mrb[14].mxu0  ;;  %v918_v25 = vmax.f32 %v2707_v21, %v2709_v23 }
 0x290   : > { %v2715_v26 = vpop.f32.mrb[15].mxu0 }
 0x291   : > { %919 = vmax.xlane.f32.xlu1 %v918_v25  ;;  %v921_v27 = vmax.f32 %v2711_v24, %v2715_v26 }
 0x293   : > { %922 = vmax.xlane.f32.xlu0 %v921_v27 }
 0x295   : > { %v2721_v29 = vpop.f32.mrb[16].mxu0 }
 0x296   : > { %v2723_v30 = vpop.f32.mrb[17].mxu0 }
 0x297   : > { %v2725_v31 = vpop.f32.mrb[18].mxu0  ;;  %v924_v32 = vmax.f32 %v2721_v29, %v2723_v30 }
 0x298   : > { %v2729_v33 = vpop.f32.mrb[19].mxu0 }
 0x299   : > { %925 = vmax.xlane.f32.xlu1 %v924_v32  ;;  %v927_v34 = vmax.f32 %v2725_v31, %v2729_v33 }
 0x29b   : > { %928 = vmax.xlane.f32.xlu0 %v927_v34 }
 0x29d   : > { %v2735_v36 = vpop.f32.mrb[20].mxu0 }
 0x29e   : > { %v2737_v37 = vpop.f32.mrb[21].mxu0 }
 0x29f   : > { %v2739_v38 = vpop.f32.mrb[22].mxu0  ;;  %v930_v39 = vmax.f32 %v2735_v36, %v2737_v37 }
 0x2a0   : > { %v2743_v40 = vpop.f32.mrb[23].mxu0 }
 0x2a1   : > { %931 = vmax.xlane.f32.xlu1 %v930_v39  ;;  %v933_v41 = vmax.f32 %v2739_v38, %v2743_v40 }
 0x2a3   : > { %934 = vmax.xlane.f32.xlu0 %v933_v41 }
 0x2a5   : > { %v2747_v42 = vpop.f32.mrb[24].mxu0 }
 0x2a6   : > { %v2749_v43 = vpop.f32.mrb[25].mxu0 }
 0x2a7   : > { %v2751_v44 = vpop.f32.mrb[26].mxu0  ;;  %v936_v45 = vmax.f32 %v2747_v42, %v2749_v43 }
 0x2a8   : > { %v2755_v46 = vpop.f32.mrb[27].mxu0 }
 0x2a9   : > { %937 = vmax.xlane.f32.xlu1 %v936_v45  ;;  %v939_v47 = vmax.f32 %v2751_v44, %v2755_v46 }
 0x2ab   : > { %940 = vmax.xlane.f32.xlu0 %v939_v47 }
 0x2ad   : > { %v2759_v48 = vpop.f32.mrb[28].mxu0 }
 0x2ae   : > { %v2761_v49 = vpop.f32.mrb[29].mxu0 }
 0x2af   : > { %v2763_v50 = vpop.f32.mrb[30].mxu0  ;;  %v942_v51 = vmax.f32 %v2759_v48, %v2761_v49 }
 0x2b0   : > { %v2767_v52 = vpop.f32.mrb[31].mxu0 }
 0x2b1   : > { %943 = vmax.xlane.f32.xlu1 %v942_v51  ;;  %v945_v53 = vmax.f32 %v2763_v50, %v2767_v52 }
 0x2b3   : > { %946 = vmax.xlane.f32.xlu0 %v945_v53 }
 0x2b5   : > { %v2771_v54 = vpop.f32.mrb[32].mxu0 }
 0x2b6   : > { %v2773_v55 = vpop.f32.mrb[33].mxu0 }
 0x2b7   : > { %v2775_v56 = vpop.f32.mrb[34].mxu0  ;;  %v1438_v57 = vmax.f32 %v2771_v54, %v2773_v55 }
 0x2b8   : > { %v2779_v58 = vpop.f32.mrb[35].mxu0 }
 0x2b9   : > { %1439 = vmax.xlane.f32.xlu1 %v1438_v57  ;;  %v1441_v59 = vmax.f32 %v2775_v56, %v2779_v58 }
 0x2bb   : > { %1442 = vmax.xlane.f32.xlu0 %v1441_v59 }
 0x2bd   : > { %v2783_v61 = vpop.f32.mrb[36].mxu0 }
 0x2be   : > { %v2785_v63 = vpop.f32.mrb[37].mxu0 }
 0x2bf   : > { %v2787_v2 = vpop.f32.mrb[38].mxu0  ;;  %v1444_v4 = vmax.f32 %v2783_v61, %v2785_v63 }
 0x2c0   : > { %v2791_v5 = vpop.f32.mrb[39].mxu0 }
 0x2c1   : > { %1445 = vmax.xlane.f32.xlu1 %v1444_v4  ;;  %v1447_v6 = vmax.f32 %v2787_v2, %v2791_v5 }
 0x2c3   : > { %1448 = vmax.xlane.f32.xlu0 %v1447_v6 }
 0x2c5   : > { %v2795_v10 = vpop.f32.mrb[40].mxu0 }
 0x2c6   : > { %v2797_v12 = vpop.f32.mrb[41].mxu0 }
 0x2c7   : > { %v2799_v13 = vpop.f32.mrb[42].mxu0  ;;  %v1450_v17 = vmax.f32 %v2795_v10, %v2797_v12 }
 0x2c8   : > { %v2803_v18 = vpop.f32.mrb[43].mxu0 }
 0x2c9   : > { %1451 = vmax.xlane.f32.xlu1 %v1450_v17  ;;  %v1453_v20 = vmax.f32 %v2799_v13, %v2803_v18 }
 0x2cb   : > { %1454 = vmax.xlane.f32.xlu0 %v1453_v20 }
 0x2cd   : > { %v2807_v22 = vpop.f32.mrb[44].mxu0 }
 0x2ce   : > { %v2809_v25 = vpop.f32.mrb[45].mxu0 }
 0x2cf   : > { %v2811_v27 = vpop.f32.mrb[46].mxu0  ;;  %v1456_v28 = vmax.f32 %v2807_v22, %v2809_v25 }
 0x2d0   : > { %v2815_v32 = vpop.f32.mrb[47].mxu0 }
 0x2d1   : > { %1457 = vmax.xlane.f32.xlu1 %v1456_v28  ;;  %v1459_v34 = vmax.f32 %v2811_v27, %v2815_v32 }
 0x2d3   : > { %1460 = vmax.xlane.f32.xlu0 %v1459_v34 }
 0x2d5   : > { %v2819_v35 = vpop.f32.mrb[48].mxu0 }
 0x2d6   : > { %v2821_v39 = vpop.f32.mrb[49].mxu0 }
 0x2d7   : > { %3165 = vst [vmem:[#allocation15_spill] sm:$0xff] %v2821_v39  ;;  %v2823_v41 = vpop.f32.mrb[50].mxu0  ;;  %v1462_v45 = vmax.f32 %v2819_v35, %v2821_v39 }
 0x2d8   : > { %3166 = vst [vmem:[#allocation16_spill] sm:$0xff] %v2823_v41  ;;  %v2827_v47 = vpop.f32.mrb[51].mxu0 }
 0x2d9   : > { %3167 = vst [vmem:[#allocation17_spill] sm:$0xff] %v2827_v47  ;;  %1463 = vmax.xlane.f32.xlu1 %v1462_v45  ;;  %v1465_v51 = vmax.f32 %v2823_v41, %v2827_v47 }
 0x2db   : > { %1466 = vmax.xlane.f32.xlu0 %v1465_v51 }
 0x2dd   : > { %v2831_v53 = vpop.f32.mrb[52].mxu0 }
 0x2de   : > { %3168 = vst [vmem:[#allocation18_spill] sm:$0xff] %v2831_v53  ;;  %v2833_v57 = vpop.f32.mrb[53].mxu0 }
 0x2df   : > { %3169 = vst [vmem:[#allocation19_spill] sm:$0xff] %v2833_v57  ;;  %v2835_v59 = vpop.f32.mrb[54].mxu0  ;;  %v1468_v4 = vmax.f32 %v2831_v53, %v2833_v57 }
 0x2e0   : > { %3170 = vst [vmem:[#allocation20_spill] sm:$0xff] %v2835_v59  ;;  %v2839_v6 = vpop.f32.mrb[55].mxu0 }
 0x2e1   : > { %3171 = vst [vmem:[#allocation21_spill] sm:$0xff] %v2839_v6  ;;  %1469 = vmax.xlane.f32.xlu1 %v1468_v4  ;;  %v1471_v17 = vmax.f32 %v2835_v59, %v2839_v6 }
 0x2e3   : > { %1472 = vmax.xlane.f32.xlu0 %v1471_v17 }
 0x2e5   : > { %v2843_v20 = vpop.f32.mrb[56].mxu0 }
 0x2e6   : > { %3172 = vst [vmem:[#allocation22_spill] sm:$0xff] %v2843_v20  ;;  %v2845_v28 = vpop.f32.mrb[57].mxu0 }
 0x2e7   : > { %3173 = vst [vmem:[#allocation23_spill] sm:$0xff] %v2845_v28  ;;  %v2847_v34 = vpop.f32.mrb[58].mxu0  ;;  %v1474_v45 = vmax.f32 %v2843_v20, %v2845_v28 }
 0x2e8   : > { %3174 = vst [vmem:[#allocation24_spill] sm:$0xff] %v2847_v34  ;;  %v2851_v51 = vpop.f32.mrb[59].mxu0 }
 0x2e9   : > { %3175 = vst [vmem:[#allocation25_spill] sm:$0xff] %v2851_v51  ;;  %1475 = vmax.xlane.f32.xlu1 %v1474_v45  ;;  %v1477_v0 = vmax.f32 %v2847_v34, %v2851_v51 }
 0x2eb   : > { %1478 = vmax.xlane.f32.xlu0 %v1477_v0 }
 0x2ed   : > { %v2855_v4 = vpop.f32.mrb[60].mxu0 }
 0x2ee   : > { %3176 = vst [vmem:[#allocation26_spill] sm:$0xff] %v2855_v4  ;;  %v2857_v6 = vpop.f32.mrb[61].mxu0 }
 0x2ef   : > { %3177 = vst [vmem:[#allocation27_spill] sm:$0xff] %v2857_v6  ;;  %v2859_v17 = vpop.f32.mrb[62].mxu0  ;;  %v1480_v59 = vmax.f32 %v2855_v4, %v2857_v6 }
 0x2f0   : > { %3178 = vst [vmem:[#allocation28_spill] sm:$0xff] %v2859_v17  ;;  %v2863_v57 = vpop.f32.mrb[63].mxu0 }
 0x2f1   : > { %3179 = vst [vmem:[#allocation29_spill] sm:$0xff] %v2863_v57  ;;  %v1483_v28 = vmax.f32 %v2859_v17, %v2863_v57  ;;  %1481 = vmax.xlane.f32.xlu1 %v1480_v59 }
 0x2f3   : > { %1484 = vmax.xlane.f32.xlu0 %v1483_v28 }
 0x306   : > { %v902_v45 = vpop.xlane.xlu0 %901 }
 0x307   : > { %v948_v0 = vsub.f32 %v2664_v60, %v902_v45  ;;  %v949_v51 = vsub.f32 %v2666_v62, %v902_v45 }
 0x308   : > { %v905_v20 = vpop.xlane.xlu1 %904 }
 0x309   : > { %v950_v34 = vsub.f32 %v2668_v1, %v905_v20  ;;  %v951_v53 = vsub.f32 %v2673_v3, %v905_v20 }
 0x30b   : > { %v980_v47 = vpack.c.bf16 %v950_v34, %v948_v0  ;;  %v981_v41 = vpack.c.bf16 %v951_v53, %v949_v51 }
 0x30d   : > { %v997_v6 = vmul.bf16 1069105081, %v980_v47  ;;  %v1000_v4 = vmul.bf16 1069105081, %v981_v41 }
 0x30e   : > { %v908_v39 = vpop.xlane.xlu0 %907 }
 0x30f   : > { %2176 = vpow.bf16 %v997_v6  ;;  %v952_v59 = vsub.f32 %v2679_v7, %v908_v39  ;;  %v953_v28 = vsub.f32 %v2681_v8, %v908_v39 }
 0x310   : > { %2178 = vpow.bf16 %v1000_v4 }
 0x312   : > { %v911_v57 = vpop.xlane.xlu0 %910 }
 0x313   : > { %v954_v60 = vsub.f32 %v2683_v9, %v911_v57  ;;  %v955_v62 = vsub.f32 %v2687_v11, %v911_v57 }
 0x315   : > { %v982_v45 = vpack.c.bf16 %v954_v60, %v952_v59  ;;  %v983_v1 = vpack.c.bf16 %v955_v62, %v953_v28 }
 0x316   : > { %v914_v17 = vpop.xlane.xlu1 %913 }
 0x317   : > { %v1003_v3 = vmul.bf16 1069105081, %v982_v45  ;;  %v1006_v20 = vmul.bf16 1069105081, %v983_v1  ;;  %v956_v47 = vsub.f32 %v2693_v14, %v914_v17  ;;  %v957_v53 = vsub.f32 %v2695_v15, %v914_v17 }
 0x318   : > { %v917_v41 = vpop.xlane.xlu0 %916 }
 0x319   : > { %2180 = vpow.bf16 %v1003_v3  ;;  %v958_v6 = vsub.f32 %v2697_v16, %v917_v41  ;;  %v959_v7 = vsub.f32 %v2701_v19, %v917_v41 }
 0x31a   : > { %v2177_v8 = vpop.eup %2176  ;;  %2182 = vpow.bf16 %v1006_v20 }
 0x31b   : > { %v2179_v9 = vpop.eup %2178  ;;  %v984_v39 = vpack.c.bf16 %v958_v6, %v956_v47  ;;  %v985_v11 = vpack.c.bf16 %v959_v7, %v957_v53  ;;  %v1046_v57 = vunpack.c.h.bf16 %v2177_v8  ;;  %v1044_v34 = vunpack.c.l.bf16 %v2177_v8 }
 0x31c   : > { %1212 = vmatprep.subr.bf16.mxu1 %v2179_v9  ;;  %v1047_v51 = vunpack.c.h.bf16 %v2179_v9  ;;  %v1045_v4 = vunpack.c.l.bf16 %v2179_v9 }
 0x31d   : > { %v1009_v0 = vmul.bf16 1069105081, %v984_v39  ;;  %v1012_v14 = vmul.bf16 1069105081, %v985_v11  ;;  %1213 = vmatpush1.bf16.msra.mxu1 %v2177_v8 }
 0x31e   : > { %v920_v59 = vpop.xlane.xlu1 %919  ;;  %v1079_v28 = vadd.f32 %v1047_v51, %v1046_v57  ;;  %v1076_v15 = vadd.f32 %v1045_v4, %v1044_v34 }
 0x31f   : > { %2184 = vpow.bf16 %v1009_v0  ;;  %v960_v19 = vsub.f32 %v2707_v21, %v920_v59  ;;  %v961_v17 = vsub.f32 %v2709_v23, %v920_v59  ;;  %v2061_v21 = vpop.f32.mrb[8].mxu1  ;;  %v2886_v23 = vld [vmem:[%s3132_s4] ss:$0 sm:$0xff] }
 0x320   : > { %2186 = vpow.bf16 %v1012_v14  ;;  %1080 = vadd.xlane.f32.xlu0 %v1079_v28  ;;  %1077 = vadd.xlane.f32.xlu1 %v1076_v15  ;;  %v923_v16 = vpop.xlane.xlu0 %922  ;;  %v585_v11 = vadd.f32 %v2061_v21, %v2886_v23  ;;  %v576_v57 = vpop.f32.mrb[9].mxu1 }
 0x321   : > { %v962_v60 = vsub.f32 %v2711_v24, %v923_v16  ;;  %v963_v62 = vsub.f32 %v2715_v26, %v923_v16  ;;  %v2062_v14 = vpop.f32.mrb[10].mxu1  ;;  %v577_v28 = vadd.f32 %v2886_v23, %v576_v57 }
 0x322   : > { %v588_v15 = vadd.f32 %v2062_v14, %v2886_v23  ;;  %v579_v16 = vpop.f32.mrb[11].mxu1 }
 0x323   : > { %v986_v45 = vpack.c.bf16 %v962_v60, %v960_v19  ;;  %v987_v1 = vpack.c.bf16 %v963_v62, %v961_v17 }
 0x324   : > { %v2181_v3 = vpop.eup %2180 }
 0x325   : > { %v2183_v20 = vpop.eup %2182  ;;  %v1015_v47 = vmul.bf16 1069105081, %v986_v45  ;;  %v1018_v41 = vmul.bf16 1069105081, %v987_v1  ;;  %v1050_v53 = vunpack.c.h.bf16 %v2181_v3  ;;  %v1048_v6 = vunpack.c.l.bf16 %v2181_v3 }
 0x326   : > { %1214 = vmatprep.subr.bf16.mxu1 %v2183_v20  ;;  %v926_v7 = vpop.xlane.xlu1 %925  ;;  %v1051_v8 = vunpack.c.h.bf16 %v2183_v20  ;;  %v1049_v9 = vunpack.c.l.bf16 %v2183_v20 }
 0x327   : > { %2188 = vpow.bf16 %v1015_v47  ;;  %1215 = vmatpush1.bf16.msra.mxu1 %v2181_v3  ;;  %v964_v34 = vsub.f32 %v2721_v29, %v926_v7  ;;  %v965_v51 = vsub.f32 %v2723_v30, %v926_v7 }
 0x328   : > { %2190 = vpow.bf16 %v1018_v41  ;;  %v929_v24 = vpop.xlane.xlu0 %928  ;;  %v1085_v26 = vadd.f32 %v1051_v8, %v1050_v53  ;;  %v1082_v39 = vadd.f32 %v1049_v9, %v1048_v6 }
 0x329   : > { %v966_v4 = vsub.f32 %v2725_v31, %v929_v24  ;;  %v967_v0 = vsub.f32 %v2729_v33, %v929_v24  ;;  %v704_v31 = vpack.c.bf16 %v588_v15, %v585_v11  ;;  %v580_v33 = vadd.f32 %v2886_v23, %v579_v16 }
 0x32a   : > { %v2185_v59 = vpop.eup %2184  ;;  %1086 = vadd.xlane.f32.xlu0 %v1085_v26  ;;  %1083 = vadd.xlane.f32.xlu1 %v1082_v39 }
 0x32b   : > { %v2187_v19 = vpop.eup %2186  ;;  %v988_v17 = vpack.c.bf16 %v966_v4, %v964_v34  ;;  %v989_v60 = vpack.c.bf16 %v967_v0, %v965_v51  ;;  %v1054_v62 = vunpack.c.h.bf16 %v2185_v59  ;;  %v1052_v29 = vunpack.c.l.bf16 %v2185_v59  ;;  %720 = vst.msk [vmem:[#allocation3 + $0x8] sm:$0xff] %vm371_vm0, %v704_v31 }
 0x32c   : > { %1216 = vmatprep.subr.bf16.mxu1 %v2187_v19  ;;  %v1055_v30 = vunpack.c.h.bf16 %v2187_v19  ;;  %v1053_v45 = vunpack.c.l.bf16 %v2187_v19  ;;  %v703_v53 = vpack.c.bf16 %v580_v33, %v577_v28 }
 0x32d   : > { %v1021_v1 = vmul.bf16 1069105081, %v988_v17  ;;  %v1024_v3 = vmul.bf16 1069105081, %v989_v60  ;;  %1217 = vmatpush1.bf16.msra.mxu1 %v2185_v59 }
 0x32e   : > { %v932_v20 = vpop.xlane.xlu1 %931  ;;  %v1091_v47 = vadd.f32 %v1055_v30, %v1054_v62  ;;  %v1088_v41 = vadd.f32 %v1053_v45, %v1052_v29  ;;  %719 = vst.msk [vmem:[#allocation3] sm:$0xff] %vm371_vm0, %v703_v53 }
 0x32f   : > { %2192 = vpow.bf16 %v1021_v1  ;;  %v968_v7 = vsub.f32 %v2735_v36, %v932_v20  ;;  %v969_v8 = vsub.f32 %v2737_v37, %v932_v20 }
 0x330   : > { %2194 = vpow.bf16 %v1024_v3  ;;  %1092 = vadd.xlane.f32.xlu0 %v1091_v47  ;;  %1089 = vadd.xlane.f32.xlu1 %v1088_v41  ;;  %v935_v6 = vpop.xlane.xlu0 %934 }
 0x331   : > { %v970_v9 = vsub.f32 %v2739_v38, %v935_v6  ;;  %v971_v21 = vsub.f32 %v2743_v40, %v935_v6  ;;  %v2065_v38 = vpop.f32.mrb[12].mxu1 }
 0x332   : > { %v2189_v24 = vpop.eup %2188  ;;  %v592_v17 = vpop.f32.mrb[13].mxu1 }
 0x333   : > { %v2191_v26 = vpop.eup %2190  ;;  %v990_v39 = vpack.c.bf16 %v970_v9, %v968_v7  ;;  %v991_v11 = vpack.c.bf16 %v971_v21, %v969_v8  ;;  %v1058_v57 = vunpack.c.h.bf16 %v2189_v24  ;;  %v1056_v34 = vunpack.c.l.bf16 %v2189_v24  ;;  %v2066_v62 = vpop.f32.mrb[14].mxu1 }
 0x334   : > { %1218 = vmatprep.subr.bf16.mxu1 %v2191_v26  ;;  %v1059_v51 = vunpack.c.h.bf16 %v2191_v26  ;;  %v1057_v4 = vunpack.c.l.bf16 %v2191_v26  ;;  %v595_v1 = vpop.f32.mrb[15].mxu1 }
 0x335   : > { %v1027_v0 = vmul.bf16 1069105081, %v990_v39  ;;  %v1030_v14 = vmul.bf16 1069105081, %v991_v11  ;;  %1219 = vmatpush1.bf16.msra.mxu1 %v2189_v24  ;;  %v601_v39 = vadd.f32 %v2065_v38, %v2886_v23  ;;  %v2069_v38 = vpop.f32.mrb[16].mxu1 }
 0x336   : > { %v938_v59 = vpop.xlane.xlu1 %937  ;;  %v1097_v36 = vadd.f32 %v1059_v51, %v1058_v57  ;;  %v1094_v28 = vadd.f32 %v1057_v4, %v1056_v34 }
 0x337   : > { %2196 = vpow.bf16 %v1027_v0  ;;  %v972_v40 = vsub.f32 %v2747_v42, %v938_v59  ;;  %v973_v15 = vsub.f32 %v2749_v43, %v938_v59  ;;  %v593_v42 = vadd.f32 %v2886_v23, %v592_v17  ;;  %v608_v17 = vpop.f32.mrb[17].mxu1 }
 0x338   : > { %2198 = vpow.bf16 %v1030_v14  ;;  %1098 = vadd.xlane.f32.xlu0 %v1097_v36  ;;  %1095 = vadd.xlane.f32.xlu1 %v1094_v28  ;;  %v941_v37 = vpop.xlane.xlu0 %940 }
 0x339   : > { %v974_v16 = vsub.f32 %v2751_v44, %v941_v37  ;;  %v975_v19 = vsub.f32 %v2755_v46, %v941_v37  ;;  %v596_v44 = vadd.f32 %v2886_v23, %v595_v1 }
 0x33a   : > { %v2193_v60 = vpop.eup %2192 }
 0x33b   : > { %v2195_v29 = vpop.eup %2194  ;;  %v992_v30 = vpack.c.bf16 %v974_v16, %v972_v40  ;;  %v993_v45 = vpack.c.bf16 %v975_v19, %v973_v15  ;;  %v1062_v31 = vunpack.c.h.bf16 %v2193_v60  ;;  %v1060_v33 = vunpack.c.l.bf16 %v2193_v60 }
 0x33c   : > { %1220 = vmatprep.subr.bf16.mxu1 %v2195_v29  ;;  %v1063_v3 = vunpack.c.h.bf16 %v2195_v29  ;;  %v1061_v20 = vunpack.c.l.bf16 %v2195_v29  ;;  %v705_v6 = vpack.c.bf16 %v596_v44, %v593_v42 }
 0x33d   : > { %v1033_v47 = vmul.bf16 1069105081, %v992_v30  ;;  %v1036_v43 = vmul.bf16 1069105081, %v993_v45  ;;  %1221 = vmatpush1.bf16.msra.mxu1 %v2193_v60 }
 0x33e   : > { %v944_v46 = vpop.xlane.xlu1 %943  ;;  %v1103_v41 = vadd.f32 %v1063_v3, %v1062_v31  ;;  %v1100_v53 = vadd.f32 %v1061_v20, %v1060_v33  ;;  %721 = vst.msk [vmem:[#allocation3 + $0x10] sm:$0xff] %vm371_vm0, %v705_v6 }
 0x33f   : > { %2200 = vpow.bf16 %v1033_v47  ;;  %v976_v8 = vsub.f32 %v2759_v48, %v944_v46  ;;  %v977_v9 = vsub.f32 %v2761_v49, %v944_v46  ;;  %v604_v48 = vadd.f32 %v2066_v62, %v2886_v23  ;;  %v2070_v62 = vpop.f32.mrb[18].mxu1 }
 0x340   : > { %2202 = vpow.bf16 %v1036_v43  ;;  %1104 = vadd.xlane.f32.xlu0 %v1103_v41  ;;  %1101 = vadd.xlane.f32.xlu1 %v1100_v53  ;;  %v947_v7 = vpop.xlane.xlu0 %946  ;;  %v611_v1 = vpop.f32.mrb[19].mxu1 }
 0x341   : > { %v978_v21 = vsub.f32 %v2763_v50, %v947_v7  ;;  %v979_v24 = vsub.f32 %v2767_v52, %v947_v7  ;;  %v706_v28 = vpack.c.bf16 %v604_v48, %v601_v39  ;;  %v2073_v48 = vpop.f32.mrb[20].mxu1 }
 0x342   : > { %v2197_v26 = vpop.eup %2196 }
 0x343   : > { %v2199_v11 = vpop.eup %2198  ;;  %v994_v57 = vpack.c.bf16 %v978_v21, %v976_v8  ;;  %v995_v34 = vpack.c.bf16 %v979_v24, %v977_v9  ;;  %v1066_v51 = vunpack.c.h.bf16 %v2197_v26  ;;  %v1064_v4 = vunpack.c.l.bf16 %v2197_v26  ;;  %722 = vst.msk [vmem:[#allocation3 + $0x18] sm:$0xff] %vm371_vm0, %v706_v28 }
 0x344   : > { %1222 = vmatprep.subr.bf16.mxu1 %v2199_v11  ;;  %v1067_v0 = vunpack.c.h.bf16 %v2199_v11  ;;  %v1065_v14 = vunpack.c.l.bf16 %v2199_v11  ;;  %v617_v9 = vadd.f32 %v2069_v38, %v2886_v23  ;;  %v620_v21 = vadd.f32 %v2070_v62, %v2886_v23 }
 0x345   : > { %v1039_v49 = vmul.bf16 1069105081, %v994_v57  ;;  %v1042_v59 = vmul.bf16 1069105081, %v995_v34  ;;  %1223 = vmatpush1.bf16.msra.mxu1 %v2197_v26 }
 0x346   : > { %v1440_v50 = vpop.xlane.xlu1 %1439  ;;  %v1109_v52 = vadd.f32 %v1067_v0, %v1066_v51  ;;  %v1106_v36 = vadd.f32 %v1065_v14, %v1064_v4 }
 0x347   : > { %2204 = vpow.bf16 %v1039_v49  ;;  %v1486_v40 = vsub.f32 %v2771_v54, %v1440_v50  ;;  %v1487_v15 = vsub.f32 %v2773_v55, %v1440_v50  ;;  %v609_v54 = vadd.f32 %v2886_v23, %v608_v17 }
 0x348   : > { %2206 = vpow.bf16 %v1042_v59  ;;  %1110 = vadd.xlane.f32.xlu0 %v1109_v52  ;;  %1107 = vadd.xlane.f32.xlu1 %v1106_v36  ;;  %v1443_v37 = vpop.xlane.xlu0 %1442  ;;  %v612_v55 = vadd.f32 %v2886_v23, %v611_v1  ;;  %v624_v36 = vpop.f32.mrb[21].mxu1 }
 0x349   : > { %v1488_v16 = vsub.f32 %v2775_v56, %v1443_v37  ;;  %v1489_v19 = vsub.f32 %v2779_v58, %v1443_v37  ;;  %v2074_v37 = vpop.f32.mrb[22].mxu1 }
 0x34a   : > { %v2201_v60 = vpop.eup %2200  ;;  %v707_v44 = vpack.c.bf16 %v612_v55, %v609_v54  ;;  %v627_v17 = vpop.f32.mrb[23].mxu1 }
 0x34b   : > { %v2203_v29 = vpop.eup %2202  ;;  %v1518_v30 = vpack.c.bf16 %v1488_v16, %v1486_v40  ;;  %v1519_v45 = vpack.c.bf16 %v1489_v19, %v1487_v15  ;;  %v1070_v31 = vunpack.c.h.bf16 %v2201_v60  ;;  %v1068_v33 = vunpack.c.l.bf16 %v2201_v60 }
 0x34c   : > { %1224 = vmatprep.subr.bf16.mxu1 %v2203_v29  ;;  %v1071_v3 = vunpack.c.h.bf16 %v2203_v29  ;;  %v1069_v20 = vunpack.c.l.bf16 %v2203_v29  ;;  %723 = vst.msk [vmem:[#allocation3 + $0x20] sm:$0xff] %vm371_vm0, %v707_v44 }
 0x34d   : > { %v1535_v42 = vmul.bf16 1069105081, %v1518_v30  ;;  %v1538_v56 = vmul.bf16 1069105081, %v1519_v45  ;;  %1225 = vmatpush1.bf16.msra.mxu1 %v2201_v60 }
 0x34e   : > { %v1446_v58 = vpop.xlane.xlu1 %1445  ;;  %v1115_v47 = vadd.f32 %v1071_v3, %v1070_v31  ;;  %v1112_v43 = vadd.f32 %v1069_v20, %v1068_v33 }
 0x34f   : > { %2208 = vpow.bf16 %v1535_v42  ;;  %v1490_v41 = vsub.f32 %v2783_v61, %v1446_v58  ;;  %v1491_v53 = vsub.f32 %v2785_v63, %v1446_v58  ;;  %v708_v61 = vpack.c.bf16 %v620_v21, %v617_v9  ;;  %v2077_v9 = vpop.f32.mrb[24].mxu1 }
 0x350   : > { %2210 = vpow.bf16 %v1538_v56  ;;  %1116 = vadd.xlane.f32.xlu0 %v1115_v47  ;;  %1113 = vadd.xlane.f32.xlu1 %v1112_v43  ;;  %v1449_v46 = vpop.xlane.xlu0 %1448  ;;  %v633_v42 = vadd.f32 %v2073_v48, %v2886_v23  ;;  %v636_v56 = vadd.f32 %v2074_v37, %v2886_v23 }
 0x351   : > { %v1492_v6 = vsub.f32 %v2787_v2, %v1449_v46  ;;  %v1493_v7 = vsub.f32 %v2791_v5, %v1449_v46  ;;  %724 = vst.msk [vmem:[#allocation3 + $0x28] sm:$0xff] %vm371_vm0, %v708_v61 }
 0x352   : > { %v2205_v8 = vpop.eup %2204  ;;  %v710_v46 = vpack.c.bf16 %v636_v56, %v633_v42 }
 0x353   : > { %v2207_v24 = vpop.eup %2206  ;;  %v1520_v26 = vpack.c.bf16 %v1492_v6, %v1490_v41  ;;  %v1521_v39 = vpack.c.bf16 %v1493_v7, %v1491_v53  ;;  %v1074_v11 = vunpack.c.h.bf16 %v2205_v8  ;;  %v1072_v57 = vunpack.c.l.bf16 %v2205_v8 }
 0x354   : > { %1226 = vmatprep.subr.bf16.mxu1 %v2207_v24  ;;  %v1075_v34 = vunpack.c.h.bf16 %v2207_v24  ;;  %v1073_v51 = vunpack.c.l.bf16 %v2207_v24  ;;  %726 = vst.msk [vmem:[#allocation3 + $0x38] sm:$0xff] %vm371_vm0, %v710_v46  ;;  %v3180_v24 = vld [vmem:[#allocation15_spill] sm:$0xff] }
 0x355   : > { %v1541_v4 = vmul.bf16 1069105081, %v1520_v26  ;;  %v1544_v63 = vmul.bf16 1069105081, %v1521_v39  ;;  %1227 = vmatpush1.bf16.msra.mxu1 %v2205_v8  ;;  %v3181_v39 = vld [vmem:[#allocation16_spill] sm:$0xff] }
 0x356   : > { %v1452_v2 = vpop.xlane.xlu1 %1451  ;;  %v1121_v0 = vadd.f32 %v1075_v34, %v1074_v11  ;;  %v1118_v5 = vadd.f32 %v1073_v51, %v1072_v57  ;;  %v3182_v57 = vld [vmem:[#allocation17_spill] sm:$0xff]  ;;  %v640_v51 = vpop.f32.mrb[25].mxu1 }
 0x357   : > { %2212 = vpow.bf16 %v1541_v4  ;;  %v1494_v49 = vsub.f32 %v2795_v10, %v1452_v2  ;;  %v1495_v59 = vsub.f32 %v2797_v12, %v1452_v2  ;;  %v625_v12 = vadd.f32 %v2886_v23, %v624_v36  ;;  %v2078_v4 = vpop.f32.mrb[26].mxu1 }
 0x358   : > { %2214 = vpow.bf16 %v1544_v63  ;;  %1122 = vadd.xlane.f32.xlu0 %v1121_v0  ;;  %1119 = vadd.xlane.f32.xlu1 %v1118_v5  ;;  %v1455_v14 = vpop.xlane.xlu0 %1454  ;;  %v643_v48 = vpop.f32.mrb[27].mxu1 }
 0x359   : > { %v1496_v50 = vsub.f32 %v2799_v13, %v1455_v14  ;;  %v1497_v52 = vsub.f32 %v2803_v18, %v1455_v14  ;;  %v628_v13 = vadd.f32 %v2886_v23, %v627_v17  ;;  %v2081_v46 = vpop.f32.mrb[28].mxu1 }
 0x35a   : > { %v2934_v28 = vpop.eup %2208 }
 0x35b   : > { %v2211_v38 = vpop.eup %2210  ;;  %v1522_v40 = vpack.c.bf16 %v1496_v50, %v1494_v49  ;;  %v1523_v15 = vpack.c.bf16 %v1497_v52, %v1495_v59  ;;  %v1584_v16 = vunpack.c.h.bf16 %v2934_v28  ;;  %v1582_v19 = vunpack.c.l.bf16 %v2934_v28 }
 0x35c   : > { %1751 = vmatprep.subr.bf16.mxu1 %v2211_v38  ;;  %v1585_v10 = vunpack.c.h.bf16 %v2211_v38  ;;  %v1583_v60 = vunpack.c.l.bf16 %v2211_v38  ;;  %v709_v31 = vpack.c.bf16 %v628_v13, %v625_v12  ;;  %v641_v59 = vadd.f32 %v2886_v23, %v640_v51  ;;  %v3185_v12 = vld [vmem:[#allocation20_spill] sm:$0xff] }
 0x35d   : > { %v1547_v18 = vmul.bf16 1069105081, %v1522_v40  ;;  %v1550_v62 = vmul.bf16 1069105081, %v1523_v15  ;;  %v644_v50 = vadd.f32 %v2886_v23, %v643_v48 }
 0x35e   : > { %v1458_v29 = vpop.xlane.xlu1 %1457  ;;  %v1617_v30 = vadd.f32 %v1585_v10, %v1584_v16  ;;  %v1614_v45 = vadd.f32 %v1583_v60, %v1582_v19  ;;  %725 = vst.msk [vmem:[#allocation3 + $0x30] sm:$0xff] %vm371_vm0, %v709_v31  ;;  %v3183_v19 = vld [vmem:[#allocation18_spill] sm:$0xff]  ;;  %v3184_v10 = vld [vmem:[#allocation19_spill] sm:$0xff] }
 0x35f   : > { %2216 = vpow.bf16 %v1547_v18  ;;  %v1498_v1 = vsub.f32 %v2807_v22, %v1458_v29  ;;  %v1499_v3 = vsub.f32 %v2809_v25, %v1458_v29  ;;  %v711_v15 = vpack.c.bf16 %v644_v50, %v641_v59  ;;  %v3186_v18 = vld [vmem:[#allocation21_spill] sm:$0xff] }
 0x360   : > { %2218 = vpow.bf16 %v1550_v62  ;;  %1618 = vadd.xlane.f32.xlu0 %v1617_v30  ;;  %1615 = vadd.xlane.f32.xlu1 %v1614_v45  ;;  %v1461_v33 = vpop.xlane.xlu0 %1460  ;;  %v649_v30 = vadd.f32 %v2077_v9, %v2886_v23  ;;  %v652_v45 = vadd.f32 %v2078_v4, %v2886_v23  ;;  %v3190_v9 = vld [vmem:[#allocation25_spill] sm:$0xff] }
 0x361   : > { %v1500_v20 = vsub.f32 %v2811_v27, %v1461_v33  ;;  %v1501_v54 = vsub.f32 %v2815_v32, %v1461_v33  ;;  %727 = vst.msk [vmem:[#allocation3 + $0x40] sm:$0xff] %vm371_vm0, %v711_v15  ;;  %v3192_v15 = vld [vmem:[#allocation27_spill] sm:$0xff] }
 0x362   : > { %v2945_v55 = vpop.eup %2212  ;;  %v712_v56 = vpack.c.bf16 %v652_v45, %v649_v30 }
 0x363   : > { %v2949_v58 = vpop.eup %2214  ;;  %v1524_v47 = vpack.c.bf16 %v1500_v20, %v1498_v1  ;;  %v1525_v43 = vpack.c.bf16 %v1501_v54, %v1499_v3  ;;  %v1588_v44 = vunpack.c.h.bf16 %v2945_v55  ;;  %v1586_v22 = vunpack.c.l.bf16 %v2945_v55 }
 0x364   : > { %v1589_v25 = vunpack.c.h.bf16 %v2949_v58  ;;  %v1587_v27 = vunpack.c.l.bf16 %v2949_v58  ;;  %728 = vst.msk [vmem:[#allocation3 + $0x48] sm:$0xff] %vm371_vm0, %v712_v56 }
 0x365   : > { %v1553_v32 = vmul.bf16 1069105081, %v1524_v47  ;;  %v1556_v41 = vmul.bf16 1069105081, %v1525_v43 }
 0x366   : > { %v1464_v53 = vpop.xlane.xlu1 %1463  ;;  %v1623_v6 = vadd.f32 %v1589_v25, %v1588_v44  ;;  %v1620_v7 = vadd.f32 %v1587_v27, %v1586_v22 }
 0x367   : > { %2220 = vpow.bf16 %v1553_v32  ;;  %v1502_v21 = vsub.f32 %v2819_v35, %v1464_v53  ;;  %v1503_v26 = vsub.f32 %v3180_v24, %v1464_v53  ;;  %v3187_v32 = vld [vmem:[#allocation22_spill] sm:$0xff]  ;;  %v3188_v53 = vld [vmem:[#allocation23_spill] sm:$0xff]  ;;  %v656_v24 = vpop.f32.mrb[29].mxu1 }
 0x368   : > { %2222 = vpow.bf16 %v1556_v41  ;;  %1624 = vadd.xlane.f32.xlu0 %v1623_v6  ;;  %1621 = vadd.xlane.f32.xlu1 %v1620_v7  ;;  %v1467_v8 = vpop.xlane.xlu0 %1466  ;;  %v3189_v7 = vld [vmem:[#allocation24_spill] sm:$0xff] }
 0x369   : > { %v1504_v11 = vsub.f32 %v3181_v39, %v1467_v8  ;;  %v1505_v34 = vsub.f32 %v3182_v57, %v1467_v8  ;;  %v2082_v39 = vpop.f32.mrb[30].mxu1 }
 0x36a   : > { %v2960_v61 = vpop.eup %2216 }
 0x36b   : > { %v2962_v63 = vpop.eup %2218  ;;  %v1526_v2 = vpack.c.bf16 %v1504_v11, %v1502_v21  ;;  %v1527_v0 = vpack.c.bf16 %v1505_v34, %v1503_v26  ;;  %v1592_v5 = vunpack.c.h.bf16 %v2960_v61  ;;  %v1590_v14 = vunpack.c.l.bf16 %v2960_v61 }
 0x36c   : > { %v1593_v35 = vunpack.c.h.bf16 %v2962_v63  ;;  %v1591_v49 = vunpack.c.l.bf16 %v2962_v63 }
 0x36d   : > { %v1559_v52 = vmul.bf16 1069105081, %v1526_v2  ;;  %v1562_v36 = vmul.bf16 1069105081, %v1527_v0  ;;  %v659_v2 = vpop.f32.mrb[31].mxu1 }
 0x36e   : > { %v1470_v37 = vpop.xlane.xlu1 %1469  ;;  %v1629_v38 = vadd.f32 %v1593_v35, %v1592_v5  ;;  %v1626_v40 = vadd.f32 %v1591_v49, %v1590_v14  ;;  %v657_v14 = vadd.f32 %v2886_v23, %v656_v24  ;;  %v660_v48 = vadd.f32 %v2886_v23, %v659_v2 }
 0x36f   : > { %2224 = vpow.bf16 %v1559_v52  ;;  %v1506_v17 = vsub.f32 %v3183_v19, %v1470_v37  ;;  %v1507_v60 = vsub.f32 %v3184_v10, %v1470_v37  ;;  %v3193_v19 = vld [vmem:[#allocation28_spill] sm:$0xff]  ;;  %v3194_v10 = vld [vmem:[#allocation29_spill] sm:$0xff] }
 0x370   : > { %2226 = vpow.bf16 %v1562_v36  ;;  %1630 = vadd.xlane.f32.xlu0 %v1629_v38  ;;  %1627 = vadd.xlane.f32.xlu1 %v1626_v40  ;;  %v1473_v16 = vpop.xlane.xlu0 %1472  ;;  %v713_v36 = vpack.c.bf16 %v660_v48, %v657_v14  ;;  %v3191_v38 = vld [vmem:[#allocation26_spill] sm:$0xff] }
 0x371   : > { %v1508_v13 = vsub.f32 %v3185_v12, %v1473_v16  ;;  %v1509_v62 = vsub.f32 %v3186_v18, %v1473_v16  ;;  %v668_v18 = vadd.f32 %v2082_v39, %v2886_v23 }
 0x372   : > { %v2975_v29 = vpop.eup %2220  ;;  %729 = vst.msk [vmem:[#allocation3 + $0x50] sm:$0xff] %vm371_vm0, %v713_v36 }
 0x373   : > { %v2979_v31 = vpop.eup %2222  ;;  %v1528_v33 = vpack.c.bf16 %v1508_v13, %v1506_v17  ;;  %v1529_v1 = vpack.c.bf16 %v1509_v62, %v1507_v60  ;;  %v1596_v3 = vunpack.c.h.bf16 %v2975_v29  ;;  %v1594_v20 = vunpack.c.l.bf16 %v2975_v29 }
 0x374   : > { %v1597_v54 = vunpack.c.h.bf16 %v2979_v31  ;;  %v1595_v42 = vunpack.c.l.bf16 %v2979_v31  ;;  %v665_v13 = vadd.f32 %v2081_v46, %v2886_v23 }
 0x375   : > { %v1565_v47 = vmul.bf16 1069105081, %v1528_v33  ;;  %v1568_v43 = vmul.bf16 1069105081, %v1529_v1 }
 0x376   : > { %v1476_v44 = vpop.xlane.xlu1 %1475  ;;  %v1635_v22 = vadd.f32 %v1597_v54, %v1596_v3  ;;  %v1632_v25 = vadd.f32 %v1595_v42, %v1594_v20  ;;  %v714_v54 = vpack.c.bf16 %v668_v18, %v665_v13  ;;  %v1140_v18 = vld [vmem:[#allocation3] sm:$0xff] }
 0x377   : > { %2228 = vpow.bf16 %v1565_v47  ;;  %v1510_v41 = vsub.f32 %v3187_v32, %v1476_v44  ;;  %v1511_v6 = vsub.f32 %v3188_v53, %v1476_v44  ;;  %v2085_v44 = vpop.f32.mrb[32].mxu1 }
 0x378   : > { %2230 = vpow.bf16 %v1568_v43  ;;  %1636 = vadd.xlane.f32.xlu0 %v1635_v22  ;;  %1633 = vadd.xlane.f32.xlu1 %v1632_v25  ;;  %v1479_v27 = vpop.xlane.xlu0 %1478  ;;  %730 = vst.msk [vmem:[#allocation3 + $0x58] sm:$0xff] %vm371_vm0, %v714_v54  ;;  %v672_v22 = vpop.f32.mrb[33].mxu1 }
 0x379   : > { %v1512_v8 = vsub.f32 %v3189_v7, %v1479_v27  ;;  %v1513_v21 = vsub.f32 %v3190_v9, %v1479_v27  ;;  %v2086_v27 = vpop.f32.mrb[34].mxu1 }
 0x37a   : > { %v2990_v26 = vpop.eup %2224  ;;  %v675_v53 = vpop.f32.mrb[35].mxu1 }
 0x37b   : > { %v2992_v11 = vpop.eup %2226  ;;  %v1530_v57 = vpack.c.bf16 %v1512_v8, %v1510_v41  ;;  %v1531_v34 = vpack.c.bf16 %v1513_v21, %v1511_v6  ;;  %v1600_v51 = vunpack.c.h.bf16 %v2990_v26  ;;  %v1598_v4 = vunpack.c.l.bf16 %v2990_v26  ;;  %v2089_v14 = vpop.f32.mrb[36].mxu1 }
 0x37c   : > { %v1601_v0 = vunpack.c.h.bf16 %v2992_v11  ;;  %v1599_v5 = vunpack.c.l.bf16 %v2992_v11  ;;  %v673_v8 = vadd.f32 %v2886_v23, %v672_v22  ;;  %v676_v9 = vadd.f32 %v2886_v23, %v675_v53 }
 0x37d   : > { %v1571_v35 = vmul.bf16 1069105081, %v1530_v57  ;;  %v1574_v49 = vmul.bf16 1069105081, %v1531_v34  ;;  %v681_v57 = vadd.f32 %v2085_v44, %v2886_v23  ;;  %v684_v34 = vadd.f32 %v2086_v27, %v2886_v23  ;;  %v1142_v44 = vld [vmem:[#allocation3 + $0x10] sm:$0xff] }
 0x37e   : > { %v1482_v59 = vpop.xlane.xlu1 %1481  ;;  %v1641_v50 = vadd.f32 %v1601_v0, %v1600_v51  ;;  %v1638_v52 = vadd.f32 %v1599_v5, %v1598_v4  ;;  %v715_v39 = vpack.c.bf16 %v676_v9, %v673_v8  ;;  %v1152_v53 = vunpack.c.l.bf16 %v1142_v44 }
 0x37f   : > { %2232 = vpow.bf16 %v1571_v35  ;;  %v1514_v40 = vsub.f32 %v3191_v38, %v1482_v59  ;;  %v1515_v16 = vsub.f32 %v3192_v15, %v1482_v59  ;;  %v716_v51 = vpack.c.bf16 %v684_v34, %v681_v57  ;;  %v1143_v34 = vld [vmem:[#allocation3 + $0x18] sm:$0xff] }
 0x380   : > { %2234 = vpow.bf16 %v1574_v49  ;;  %1642 = vadd.xlane.f32.xlu0 %v1641_v50  ;;  %1639 = vadd.xlane.f32.xlu1 %v1638_v52  ;;  %v1485_v37 = vpop.xlane.xlu0 %1484  ;;  %731 = vst.msk [vmem:[#allocation3 + $0x60] sm:$0xff] %vm371_vm0, %v715_v39  ;;  %v688_v49 = vpop.f32.mrb[37].mxu1  ;;  %v1153_v8 = vunpack.c.h.bf16 %v1142_v44 }
 0x381   : > { %v1516_v17 = vsub.f32 %v3193_v19, %v1485_v37  ;;  %v1517_v60 = vsub.f32 %v3194_v10, %v1485_v37  ;;  %732 = vst.msk [vmem:[#allocation3 + $0x68] sm:$0xff] %vm371_vm0, %v716_v51  ;;  %v2090_v59 = vpop.f32.mrb[38].mxu1  ;;  %v697_v37 = vadd.f32 %v2089_v14, %v2886_v23  ;;  %v689_v38 = vadd.f32 %v2886_v23, %v688_v49 }
 0x382   : > { %v3005_v12 = vpop.eup %2228  ;;  %v691_v36 = vpop.f32.mrb[39].mxu1 }
 0x383   : > { %v3009_v62 = vpop.eup %2230  ;;  %v1532_v30 = vpack.c.bf16 %v1516_v17, %v1514_v40  ;;  %v1533_v45 = vpack.c.bf16 %v1517_v60, %v1515_v16  ;;  %v1604_v33 = vunpack.c.h.bf16 %v3005_v12  ;;  %v1602_v1 = vunpack.c.l.bf16 %v3005_v12 }
 0x384   : > { %v1605_v3 = vunpack.c.h.bf16 %v3009_v62  ;;  %v1603_v20 = vunpack.c.l.bf16 %v3009_v62  ;;  %v700_v40 = vadd.f32 %v2090_v59, %v2886_v23  ;;  %v692_v15 = vadd.f32 %v2886_v23, %v691_v36 }
 0x385   : > { %v1577_v42 = vmul.bf16 1069105081, %v1532_v30  ;;  %v1580_v56 = vmul.bf16 1069105081, %v1533_v45  ;;  %v1148_v45 = vunpack.c.l.bf16 %v1140_v18  ;;  %v1149_v23 = vunpack.c.h.bf16 %v1140_v18 }
 0x386   : > { %v1647_v47 = vadd.f32 %v1605_v3, %v1604_v33  ;;  %v1644_v43 = vadd.f32 %v1603_v20, %v1602_v1  ;;  %v718_v16 = vpack.c.bf16 %v700_v40, %v697_v37  ;;  %v717_v19 = vpack.c.bf16 %v692_v15, %v689_v38  ;;  %v1141_v1 = vld [vmem:[#allocation3 + $0x8] sm:$0xff] }
 0x387   : > { %2236 = vpow.bf16 %v1577_v42 }
 0x388   : > { %2238 = vpow.bf16 %v1580_v56  ;;  %1648 = vadd.xlane.f32.xlu0 %v1647_v47  ;;  %1645 = vadd.xlane.f32.xlu1 %v1644_v43  ;;  %734 = vst.msk [vmem:[#allocation3 + $0x78] sm:$0xff] %vm371_vm0, %v718_v16  ;;  %733 = vst.msk [vmem:[#allocation3 + $0x70] sm:$0xff] %vm371_vm0, %v717_v19  ;;  %v1150_v56 = vunpack.c.l.bf16 %v1141_v1  ;;  %v1151_v47 = vunpack.c.h.bf16 %v1141_v1 }
 0x38a   : > { %v3016_v25 = vpop.eup %2232 }
 0x38b   : > { %v3018_v46 = vpop.eup %2234  ;;  %v1608_v32 = vunpack.c.h.bf16 %v3016_v25  ;;  %v1606_v41 = vunpack.c.l.bf16 %v3016_v25 }
 0x38c   : > { %v1609_v6 = vunpack.c.h.bf16 %v3018_v46  ;;  %v1607_v7 = vunpack.c.l.bf16 %v3018_v46 }
 0x38e   : > { %v1653_v21 = vadd.f32 %v1609_v6, %v1608_v32  ;;  %v1650_v24 = vadd.f32 %v1607_v7, %v1606_v41 }
 0x390   : > { %1654 = vadd.xlane.f32.xlu0 %v1653_v21  ;;  %1651 = vadd.xlane.f32.xlu1 %v1650_v24 }
 0x392   : > { %v3029_v4 = vpop.eup %2236 }
 0x393   : > { %v3031_v2 = vpop.eup %2238  ;;  %v1612_v0 = vunpack.c.h.bf16 %v3029_v4  ;;  %v1610_v5 = vunpack.c.l.bf16 %v3029_v4 }
 0x394   : > { %v1613_v48 = vunpack.c.h.bf16 %v3031_v2  ;;  %v1611_v35 = vunpack.c.l.bf16 %v3031_v2 }
 0x396   : > { %v1659_v50 = vadd.f32 %v1613_v48, %v1612_v0  ;;  %v1656_v52 = vadd.f32 %v1611_v35, %v1610_v5  ;;  %v1154_v0 = vunpack.c.l.bf16 %v1143_v34  ;;  %v1155_v48 = vunpack.c.h.bf16 %v1143_v34 }
 0x398   : > { %1660 = vadd.xlane.f32.xlu0 %v1659_v50  ;;  %1657 = vadd.xlane.f32.xlu1 %v1656_v52  ;;  %v1144_v52 = vld [vmem:[#allocation3 + $0x20] sm:$0xff] }
 0x399   : > { %v1156_v37 = vunpack.c.l.bf16 %v1144_v52  ;;  %v1157_v15 = vunpack.c.h.bf16 %v1144_v52 }
 0x3ad   : > { %v1078_v17 = vpop.xlane.xlu1 %1077  ;;  %v1081_v10 = vpop.xlane.xlu0 %1080 }
 0x3ae   : > { %2240 = vrcp.f32 %v1078_v17 }
 0x3af   : > { %2242 = vrcp.f32 %v1081_v10 }
 0x3b7   : > { %v1084_v60 = vpop.xlane.xlu1 %1083  ;;  %v1087_v13 = vpop.xlane.xlu0 %1086 }
 0x3b8   : > { %2244 = vrcp.f32 %v1084_v60  ;;  %v2241_v30 = vpop.eup %2240  ;;  %v1145_v60 = vld [vmem:[#allocation3 + $0x28] sm:$0xff] }
 0x3b9   : > { %2246 = vrcp.f32 %v1087_v13  ;;  %v2243_v33 = vpop.eup %2242  ;;  %v1164_v54 = vmul.f32 %v2241_v30, %v1148_v45  ;;  %v1158_v18 = vunpack.c.l.bf16 %v1145_v60 }
 0x3ba   : > { %v1165_v42 = vmul.f32 %v2243_v33, %v1149_v23  ;;  %v1159_v23 = vunpack.c.h.bf16 %v1145_v60 }
 0x3bc   : > { %v1180_v32 = vpack.c.bf16 %v1165_v42, %v1164_v54  ;;  %v1146_v54 = vld [vmem:[#allocation3 + $0x30] sm:$0xff] }
 0x3bd   : > { %v1090_v3 = vpop.xlane.xlu1 %1089  ;;  %v1093_v20 = vpop.xlane.xlu0 %1092  ;;  %v1161_v44 = vunpack.c.h.bf16 %v1146_v54 }
 0x3be   : > { %2248 = vrcp.f32 %v1090_v3 }
 0x3bf   : > { %2250 = vrcp.f32 %v1093_v20 }
 0x3c2   : > { %v2245_v43 = vpop.eup %2244 }
 0x3c3   : > { %v2247_v22 = vpop.eup %2246  ;;  %v1166_v27 = vmul.f32 %v2245_v43, %v1150_v56  ;;  %v1160_v56 = vunpack.c.l.bf16 %v1146_v54 }
 0x3c4   : > { %v1167_v41 = vmul.f32 %v2247_v22, %v1151_v47 }
 0x3c5   : > { %v1096_v6 = vpop.xlane.xlu1 %1095  ;;  %1196 = vxpose.xlu1.c.b16.start [1/8] (narrow) %v1180_v32, 32  ;;  %v1099_v7 = vpop.xlane.xlu0 %1098 }
 0x3c6   : > { %2252 = vrcp.f32 %v1096_v6  ;;  %v1181_v9 = vpack.c.bf16 %v1167_v41, %v1166_v27 }
 0x3c7   : > { %2254 = vrcp.f32 %v1099_v7 }
 0x3c8   : > { %v2249_v21 = vpop.eup %2248 }
 0x3c9   : > { %v2251_v24 = vpop.eup %2250  ;;  %v1168_v39 = vmul.f32 %v2249_v21, %v1152_v53  ;;  %1197 = vxpose.xlu1.c.b16.cont [2/8] (narrow) %v1181_v9, 32  ;;  %v1147_v53 = vld [vmem:[#allocation3 + $0x38] sm:$0xff] }
 0x3ca   : > { %v1169_v57 = vmul.f32 %v2251_v24, %v1153_v8  ;;  %v1162_v7 = vunpack.c.l.bf16 %v1147_v53  ;;  %v1163_v21 = vunpack.c.h.bf16 %v1147_v53 }
 0x3cc   : > { %v1182_v51 = vpack.c.bf16 %v1169_v57, %v1168_v39 }
 0x3cd   : > { %v1102_v5 = vpop.xlane.xlu1 %1101  ;;  %v1105_v14 = vpop.xlane.xlu0 %1104 }
 0x3ce   : > { %2256 = vrcp.f32 %v1102_v5  ;;  %1198 = vxpose.xlu1.c.b16.cont [3/8] (narrow) %v1182_v51, 32  ;;  %v1679_v51 = vld [vmem:[#allocation3 + $0x40] sm:$0xff] }
 0x3cf   : > { %2258 = vrcp.f32 %v1105_v14  ;;  %v1687_v5 = vunpack.c.l.bf16 %v1679_v51 }
 0x3d0   : > { %v2253_v35 = vpop.eup %2252 }
 0x3d1   : > { %v2255_v49 = vpop.eup %2254  ;;  %v1170_v59 = vmul.f32 %v2253_v35, %v1154_v0  ;;  %v1688_v35 = vunpack.c.h.bf16 %v1679_v51 }
 0x3d2   : > { %v1171_v50 = vmul.f32 %v2255_v49, %v1155_v48  ;;  %v1828_v49 = vld [vmem:[%s3133_s5] sm:$0xff] }
 0x3d4   : > { %v1183_v36 = vpack.c.bf16 %v1171_v50, %v1170_v59 }
 0x3d5   : > { %v1108_v38 = vpop.xlane.xlu1 %1107  ;;  %v1111_v40 = vpop.xlane.xlu0 %1110 }
 0x3d6   : > { %2260 = vrcp.f32 %v1108_v38  ;;  %1199 = vxpose.xlu1.c.b16.cont [4/8] (narrow) %v1183_v36, 32  ;;  %v1830_v38 = vld [vmem:[%s3133_s5 + $0x10] sm:$0xff] }
 0x3d7   : > { %2262 = vrcp.f32 %v1111_v40 }
 0x3d8   : > { %v2257_v16 = vpop.eup %2256 }
 0x3d9   : > { %v2259_v19 = vpop.eup %2258  ;;  %v1172_v17 = vmul.f32 %v2257_v16, %v1156_v37  ;;  %v1680_v37 = vld [vmem:[#allocation3 + $0x48] sm:$0xff] }
 0x3da   : > { %v1173_v10 = vmul.f32 %v2259_v19, %v1157_v15  ;;  %v1689_v15 = vunpack.c.l.bf16 %v1680_v37 }
 0x3dc   : > { %v1184_v13 = vpack.c.bf16 %v1173_v10, %v1172_v17  ;;  %v1690_v17 = vunpack.c.h.bf16 %v1680_v37  ;;  %v1831_v10 = vld [vmem:[%s3133_s5 + $0x18] sm:$0xff] }
 0x3dd   : > { %v1114_v30 = vpop.xlane.xlu1 %1113  ;;  %v1117_v45 = vpop.xlane.xlu0 %1116 }
 0x3de   : > { %2264 = vrcp.f32 %v1114_v30  ;;  %1200 = vxpose.xlu1.c.b16.cont [5/8] (narrow) %v1184_v13, 32 }
 0x3df   : > { %2266 = vrcp.f32 %v1117_v45  ;;  %v1681_v45 = vld [vmem:[#allocation3 + $0x50] sm:$0xff] }
 0x3e0   : > { %v2261_v33 = vpop.eup %2260 }
 0x3e1   : > { %v2263_v1 = vpop.eup %2262  ;;  %v1174_v3 = vmul.f32 %v2261_v33, %v1158_v18  ;;  %v1691_v33 = vunpack.c.l.bf16 %v1681_v45 }
 0x3e2   : > { %v1175_v20 = vmul.f32 %v2263_v1, %v1159_v23 }
 0x3e4   : > { %v1185_v42 = vpack.c.bf16 %v1175_v20, %v1174_v3  ;;  %v1692_v20 = vunpack.c.h.bf16 %v1681_v45 }
 0x3e5   : > { %v1120_v47 = vpop.xlane.xlu1 %1119  ;;  %v1123_v43 = vpop.xlane.xlu0 %1122 }
 0x3e6   : > { %2268 = vrcp.f32 %v1120_v47  ;;  %1201 = vxpose.xlu1.c.b16.cont [6/8] (narrow) %v1185_v42, 32 }
 0x3e7   : > { %2270 = vrcp.f32 %v1123_v43  ;;  %v1682_v43 = vld [vmem:[#allocation3 + $0x58] sm:$0xff] }
 0x3e8   : > { %v2265_v22 = vpop.eup %2264 }
 0x3e9   : > { %v2267_v27 = vpop.eup %2266  ;;  %v1176_v32 = vmul.f32 %v2265_v22, %v1160_v56  ;;  %v1693_v22 = vunpack.c.l.bf16 %v1682_v43 }
 0x3ea   : > { %v1177_v41 = vmul.f32 %v2267_v27, %v1161_v44 }
 0x3ec   : > { %v1186_v6 = vpack.c.bf16 %v1177_v41, %v1176_v32  ;;  %v1694_v41 = vunpack.c.h.bf16 %v1682_v43  ;;  %v1829_v43 = vld [vmem:[%s3133_s5 + $0x8] sm:$0xff] }
 0x3ed   : > { %v1616_v8 = vpop.xlane.xlu1 %1615  ;;  %v1619_v9 = vpop.xlane.xlu0 %1618 }
 0x3ee   : > { %2272 = vrcp.f32 %v1616_v8  ;;  %1202 = vxpose.xlu1.c.b16.cont [7/8] (narrow) %v1186_v6, 32 }
 0x3ef   : > { %2274 = vrcp.f32 %v1619_v9  ;;  %v1683_v9 = vld [vmem:[#allocation3 + $0x60] sm:$0xff] }
 0x3f0   : > { %v2269_v24 = vpop.eup %2268 }
 0x3f1   : > { %v2271_v39 = vpop.eup %2270  ;;  %v1178_v57 = vmul.f32 %v2269_v24, %v1162_v7  ;;  %v1695_v24 = vunpack.c.l.bf16 %v1683_v9 }
 0x3f2   : > { %v1179_v34 = vmul.f32 %v2271_v39, %v1163_v21 }
 0x3f4   : > { %v1187_v0 = vpack.c.bf16 %v1179_v34, %v1178_v57  ;;  %v1696_v34 = vunpack.c.h.bf16 %v1683_v9 }
 0x3f5   : > { %v1622_v14 = vpop.xlane.xlu1 %1621  ;;  %v1625_v48 = vpop.xlane.xlu0 %1624 }
 0x3f6   : > { %2276 = vrcp.f32 %v1622_v14  ;;  %1203 = vxpose.xlu1.c.b16.end [8/8] (narrow) %v1187_v0, 32 }
 0x3f7   : > { %2278 = vrcp.f32 %v1625_v48  ;;  %v1684_v48 = vld [vmem:[#allocation3 + $0x68] sm:$0xff] }
 0x3f8   : > { %v2273_v59 = vpop.eup %2272 }
 0x3f9   : > { %v2275_v50 = vpop.eup %2274  ;;  %v1703_v52 = vmul.f32 %v2273_v59, %v1687_v5 }
 0x3fa   : > { %v1704_v36 = vmul.f32 %v2275_v50, %v1688_v35  ;;  %1834 = vperm.xlu1 %2165, %v1828_v49   ;;  %v1697_v50 = vunpack.c.l.bf16 %v1684_v48 }
 0x3fc   : > { %v1719_v40 = vpack.c.bf16 %v1704_v36, %v1703_v52  ;;  %v1698_v36 = vunpack.c.h.bf16 %v1684_v48 }
 0x3fd   : > { %v1628_v16 = vpop.xlane.xlu1 %1627  ;;  %v1631_v19 = vpop.xlane.xlu0 %1630 }
 0x3fe   : > { %2280 = vrcp.f32 %v1628_v16  ;;  %1844 = vperm.xlu1 %2165, %v1830_v38   ;;  %1735 = vxpose.xlu0.c.b16.start [1/8] (narrow) %v1719_v40, 32 }
 0x3ff   : > { %2282 = vrcp.f32 %v1631_v19 }
 0x400   : > { %v2277_v60 = vpop.eup %2276 }
 0x401   : > { %v2279_v13 = vpop.eup %2278  ;;  %v1705_v18 = vmul.f32 %v2277_v60, %v1689_v15  ;;  %v1685_v15 = vld [vmem:[#allocation3 + $0x70] sm:$0xff] }
 0x402   : > { %v1706_v30 = vmul.f32 %v2279_v13, %v1690_v17  ;;  %1849 = vperm.xlu1 %2165, %v1831_v10   ;;  %v1699_v10 = vunpack.c.l.bf16 %v1685_v15  ;;  %v1700_v13 = vunpack.c.h.bf16 %v1685_v15 }
 0x404   : > { %v1720_v23 = vpack.c.bf16 %v1706_v30, %v1705_v18 }
 0x405   : > { %v1634_v1 = vpop.xlane.xlu1 %1633  ;;  %v1637_v3 = vpop.xlane.xlu0 %1636 }
 0x406   : > { %2284 = vrcp.f32 %v1634_v1  ;;  %1736 = vxpose.xlu0.c.b16.cont [2/8] (narrow) %v1720_v23, 32  ;;  %v1686_v23 = vld [vmem:[#allocation3 + $0x78] sm:$0xff] }
 0x407   : > { %2286 = vrcp.f32 %v1637_v3  ;;  %v1701_v1 = vunpack.c.l.bf16 %v1686_v23 }
 0x408   : > { %v2281_v54 = vpop.eup %2280 }
 0x409   : > { %v2283_v42 = vpop.eup %2282  ;;  %v1707_v56 = vmul.f32 %v2281_v54, %v1691_v33 }
 0x40a   : > { %v1708_v47 = vmul.f32 %v2283_v42, %v1692_v20  ;;  %v1702_v20 = vunpack.c.h.bf16 %v1686_v23 }
 0x40c   : > { %v1721_v44 = vpack.c.bf16 %v1708_v47, %v1707_v56 }
 0x40d   : > { %v1640_v27 = vpop.xlane.xlu1 %1639  ;;  %v1643_v32 = vpop.xlane.xlu0 %1642 }
 0x40e   : > { %2288 = vrcp.f32 %v1640_v27  ;;  %1737 = vxpose.xlu0.c.b16.cont [3/8] (narrow) %v1721_v44, 32 }
 0x40f   : > { %2290 = vrcp.f32 %v1643_v32 }
 0x410   : > { %v2285_v53 = vpop.eup %2284 }
 0x411   : > { %v2287_v6 = vpop.eup %2286  ;;  %v1709_v7 = vmul.f32 %v2285_v53, %v1693_v22  ;;  %v3195_v22 = vmov 0  }
 0x412   : > { %v1710_v8 = vmul.f32 %v2287_v6, %v1694_v41 }
 0x414   : > { %v1722_v21 = vpack.c.bf16 %v1710_v8, %v1709_v7 }
 0x415   : > { %v1646_v39 = vpop.xlane.xlu1 %1645  ;;  %v1649_v57 = vpop.xlane.xlu0 %1648 }
 0x416   : > { %2292 = vrcp.f32 %v1646_v39  ;;  %1738 = vxpose.xlu0.c.b16.cont [4/8] (narrow) %v1722_v21, 32 }
 0x417   : > { %2294 = vrcp.f32 %v1649_v57 }
 0x418   : > { %v2289_v51 = vpop.eup %2288 }
 0x419   : > { %v2291_v0 = vpop.eup %2290  ;;  %v1711_v5 = vmul.f32 %v2289_v51, %v1695_v24 }
 0x41a   : > { %v1712_v14 = vmul.f32 %v2291_v0, %v1696_v34 }
 0x41c   : > { %v1723_v35 = vpack.c.bf16 %v1712_v14, %v1711_v5 }
 0x41d   : > { %v1652_v49 = vpop.xlane.xlu1 %1651  ;;  %v1655_v59 = vpop.xlane.xlu0 %1654 }
 0x41e   : > { %2296 = vrcp.f32 %v1652_v49  ;;  %1739 = vxpose.xlu0.c.b16.cont [5/8] (narrow) %v1723_v35, 32 }
 0x41f   : > { %2298 = vrcp.f32 %v1655_v59 }
 0x420   : > { %v2293_v52 = vpop.eup %2292 }
 0x421   : > { %v2295_v37 = vpop.eup %2294  ;;  %v1713_v38 = vmul.f32 %v2293_v52, %v1697_v50 }
 0x422   : > { %v1714_v40 = vmul.f32 %v2295_v37, %v1698_v36 }
 0x424   : > { %v1724_v16 = vpack.c.bf16 %v1714_v40, %v1713_v38 }
 0x425   : > { %v1658_v19 = vpop.xlane.xlu1 %1657  ;;  %v1661_v17 = vpop.xlane.xlu0 %1660 }
 0x426   : > { %2300 = vrcp.f32 %v1658_v19  ;;  %1740 = vxpose.xlu0.c.b16.cont [6/8] (narrow) %v1724_v16, 32 }
 0x427   : > { %2302 = vrcp.f32 %v1661_v17 }
 0x428   : > { %v2297_v60 = vpop.eup %2296 }
 0x429   : > { %v2299_v18 = vpop.eup %2298  ;;  %v1715_v30 = vmul.f32 %v2297_v60, %v1699_v10 }
 0x42a   : > { %v1716_v45 = vmul.f32 %v2299_v18, %v1700_v13 }
 0x42c   : > { %v1725_v33 = vpack.c.bf16 %v1716_v45, %v1715_v30 }
 0x42e   : > { %1741 = vxpose.xlu0.c.b16.cont [7/8] (narrow) %v1725_v33, 32 }
 0x430   : > { %v2301_v3 = vpop.eup %2300 }
 0x431   : > { %v2303_v54 = vpop.eup %2302  ;;  %v1717_v42 = vmul.f32 %v2301_v3, %v1701_v1 }
 0x432   : > { %v1718_v56 = vmul.f32 %v2303_v54, %v1702_v20 }
 0x434   : > { %v1726_v47 = vpack.c.bf16 %v1718_v56, %v1717_v42 }
 0x436   : > { %1742 = vxpose.xlu0.c.b16.end [8/8] (narrow) %v1726_v47, 32 }
 0x43f   : > { %1839 = vperm.xlu0 %2164, %v1829_v43  }
 0x440   : > { %v1204_v44 = vpop.trf.xlu1 }
 0x441   : > { %1245 = vmatmul.mubr.bf16.vlgmr.msra.gmra.mrb[40].mxu1 %v1204_v44 }
 0x442   : > { %1752 = vmatpush1.bf16.msra.mxu1 %v2934_v28  ;;  %1254 = vmatprep.mubr.bf16.mxu1 %v3195_v22 }
 0x443   : > { %1753 = vmatprep.subr.bf16.mxu1 %v2949_v58 }
 0x444   : > { %v1205_v27 = vpop.trf.xlu1 }
 0x446   : > { %1754 = vmatpush1.bf16.msra.mxu1 %v2945_v55 }
 0x447   : > { %1755 = vmatprep.subr.bf16.mxu1 %v2962_v63  ;;  %v1861_v63 = vstv %s1860_s24 }
 0x449   : > { %1255 = vmatmul.mubr.bf16.gmra.mrb[44].mxu1 %v1205_v27 }
 0x44a   : > { %1756 = vmatpush1.bf16.msra.mxu1 %v2960_v61  ;;  %1783 = vmatprep.mubr.bf16.mxu1 %v3195_v22 }
 0x44b   : > { %1757 = vmatprep.subr.bf16.mxu1 %v2979_v31 }
 0x44e   : > { %1758 = vmatpush1.bf16.msra.mxu1 %v2975_v29 }
 0x44f   : > { %1759 = vmatprep.subr.bf16.mxu1 %v2992_v11 }
 0x452   : > { %1760 = vmatpush1.bf16.msra.mxu1 %v2990_v26 }
 0x453   : > { %1761 = vmatprep.subr.bf16.mxu1 %v3009_v62 }
 0x456   : > { %1762 = vmatpush1.bf16.msra.mxu1 %v3005_v12 }
 0x457   : > { %1763 = vmatprep.subr.bf16.mxu1 %v3018_v46 }
 0x45a   : > { %1764 = vmatpush1.bf16.msra.mxu1 %v3016_v25 }
 0x45b   : > { %1765 = vmatprep.subr.bf16.mxu1 %v3031_v2 }
 0x45e   : > { %1766 = vmatpush1.bf16.msra.mxu1 %v3029_v4 }
 0x479   : > { %v1835_v58 = vpop.permute.xlu1 %1834 }
 0x47d   : > { %v1845_v4 = vpop.permute.xlu1 %1844 }
 0x480   : > { %v1743_v28 = vpop.trf.xlu0 }
 0x481   : > { %1784 = vmatmul.mubr.bf16.vlgmr.msra.gmra.mrb[40].mxu1 %v1743_v28  ;;  %v1850_v9 = vpop.permute.xlu1 %1849 }
 0x482   : > { %1793 = vmatprep.mubr.bf16.mxu1 %v3195_v22 }
 0x484   : > { %v1744_v55 = vpop.trf.xlu0 }
 0x489   : > { %1794 = vmatmul.mubr.bf16.gmra.mrb[44].mxu1 %v1744_v55 }
 0x4be   : > { %v1840_v26 = vpop.permute.xlu0 %1839 }
 0x554   : > { %v1785_v61 = vpop.f32.mrb[40].mxu1 }
 0x555   : > { %v1852_v29 = vadd.f32 %v1835_v58, %v1785_v61  ;;  %v1787_v31 = vpop.f32.mrb[41].mxu1 }
 0x556   : > { %v1853_v11 = vadd.f32 %v1835_v58, %v1787_v31  ;;  %v1789_v12 = vpop.f32.mrb[42].mxu1 }
 0x557   : > { %v1862_v62 = vmul.f32 %v1861_v63, %v1852_v29  ;;  %v1854_v25 = vadd.f32 %v1840_v26, %v1789_v12  ;;  %v1791_v46 = vpop.f32.mrb[43].mxu1 }
 0x558   : > { %v1863_v2 = vmul.f32 %v1861_v63, %v1853_v11  ;;  %v1855_v32 = vadd.f32 %v1840_v26, %v1791_v46 }
 0x559   : > { %1870 = vst [vmem:[%s302_s9] sm:$0xff] %v1862_v62  ;;  %v1864_v41 = vmul.f32 %v1861_v63, %v1854_v25 }
 0x55a   : > { %1871 = vst [vmem:[%s302_s9 + $0x8] sm:$0xff] %v1863_v2  ;;  %v1865_v53 = vmul.f32 %v1861_v63, %v1855_v32 }
 0x55b   : > { %1872 = vst [vmem:[%s302_s9 + $0x10] sm:$0xff] %v1864_v41 }
 0x55c   : > { %1873 = vst [vmem:[%s302_s9 + $0x18] sm:$0xff] %v1865_v53  ;;  %v1795_v6 = vpop.f32.mrb[44].mxu1 }
 0x55d   : > { %v1856_v7 = vadd.f32 %v1845_v4, %v1795_v6  ;;  %v1797_v8 = vpop.f32.mrb[45].mxu1 }
 0x55e   : > { %v1857_v21 = vadd.f32 %v1845_v4, %v1797_v8  ;;  %v1799_v24 = vpop.f32.mrb[46].mxu1 }
 0x55f   : > { %v1866_v39 = vmul.f32 %v1861_v63, %v1856_v7  ;;  %v1858_v57 = vadd.f32 %v1850_v9, %v1799_v24  ;;  %v1801_v34 = vpop.f32.mrb[47].mxu1 }
 0x560   : > { %v1867_v51 = vmul.f32 %v1861_v63, %v1857_v21  ;;  %v1859_v0 = vadd.f32 %v1850_v9, %v1801_v34 }
 0x561   : > { %1874 = vst [vmem:[%s302_s9 + $0x20] sm:$0xff] %v1866_v39  ;;  %v1868_v5 = vmul.f32 %v1861_v63, %v1858_v57 }
 0x562   : > { %1875 = vst [vmem:[%s302_s9 + $0x28] sm:$0xff] %v1867_v51  ;;  %v1869_v14 = vmul.f32 %v1861_v63, %v1859_v0 }
 0x563   : > { %1876 = vst [vmem:[%s302_s9 + $0x30] sm:$0xff] %v1868_v5 }
 0x564   : > { %1877 = vst [vmem:[%s302_s9 + $0x38] sm:$0xff] %v1869_v14 }
 0x565   : > { %2373 = shalt.err (!%p2370_p11)
}
 0x566   : > { %s2374_s22 = scalar_lea.hbm %s3083_s17, 1024  ;;  %s2378_s25 = scalar_lea.hbm %s3135_s7, 2048 }
 0x567   : > { %p2375_p13 = scmp.ne.s32.totalorder %s3083_s17, %s2374_s22  ;;  %p2379_p6 = scmp.lt.u32.totalorder %s3083_s17, %s3135_s7 }
 0x568   : > { %p2380_p9 = scmp.lt.u32.totalorder %s2378_s25, %s2374_s22  ;;  %p2382_p12 = scmp.lt.u32.totalorder %s2374_s22, %s3083_s17 }
 0x569   : > { %p2376_p5 = pnand %p2375_p13, %p3196_p1 }
 0x56a   : > { %p2381_p10 = por %p2380_p9, %p2379_p6 }
 0x56b   : > { %p2377_p0 = pneg %p2376_p5 }
 0x56c   : > { %p2383_p2 = por %p2382_p12, %p2381_p10 }
 0x56e   : > { %p2384_p3 = pnand %p2383_p2, %p2377_p0 }
 0x570   : > { %2387 = shalt.err (!%p2384_p3)
}
 0x571   : > { %s2438_s18 = smov 256   ;;  %s2439_s20 = smov 16  }
 0x572   : > { %2107 = dma.vmem_to_hbm [thread:$0]  (%p3196_p1), %s3078_s16, 1024, %s3083_s17, %s3087_s6, %s2438_s18, %s2438_s18, %s2439_s20  }
 0x573 PF: > { %p2124_p4 = scmp.ge.s32.totalorder %s2430_s29, 2  ;;  %s1907_s14 = sand.u32 1, %s2418_s26  }
 0x574   : > { %p3197_p7 = scmp.ne.s32.totalorder %s3157_s13, 0  ;;  %s1908_s19 = scalar_lea.sflag [#allocation8], %s1907_s14 }
 0x576   : > { %p2117_p8 = pnand %p2124_p4, %p3197_p7 }
 0x578   : > { %2413 = dma.done.wait (!%p2117_p8), %s1908_s19, 1024  }
 0x579   : > { %2415 = vsyncadd (!%p2117_p8), %s1908_s19, 4294966272  ;;  %p20_p11 = scmp.ge.s32.totalorder %s2508_s8, 4   ;;  %s3198_s26 = smov %s2422_s27 }
 0x57a   : > { %s3199_s27 = smov %s2426_s28  ;;  %s3200_s28 = smov %s2519_s11 }
 0x57b   : > { %s3201_s29 = smov %s2508_s8  ;;  %22 = sbr.rel (!%p20_p11) target bundleno = 7 (0x7), region = 94 }
 0x582   :  { %1913 = vsyncpa [#allocation7], 1 }
 0x583   :  { %1915 = vsyncpa [#allocation7 + $0x1], 1 }
 0x584   :  { %1916 = vsyncpa [#allocation10], 1 }
 0x585   :  { %1917 = vsyncpa [#allocation8], 1 }
 0x586   :  { %1919 = vsyncpa [#allocation8 + $0x1], 1 }

</bundles_post_ra>
